<compile_context>
chip_gen: v7x
topology: tpu7x:2x2x1
jax: 0.10.0
libtpu: 0.0.40
codegen_flags: <defaults>
</compile_context>

<pallas_src>
import jax
import jax.numpy as jnp
from jax import lax
from jax.experimental import pallas as pl
from jax.experimental.pallas import tpu as pltpu

D_MODEL = 128
NUM_HEADS = 8
HEAD_DIM = D_MODEL // NUM_HEADS
LN_EPS = 1e-5
MAX_ROWS_PER_BLOCK = 1024          # target Bt*T rows fed to the MXU per grid step
SCORE_BYTES_BUDGET = 4 * 1024 * 1024  # cap for per-head (bt, T, T) f32 scores


def _layernorm(x, gamma, beta):
    # x: (N, D) f32, gamma/beta: (1, D) f32
    mean = jnp.mean(x, axis=-1, keepdims=True)
    var = jnp.mean((x - mean) ** 2, axis=-1, keepdims=True)
    inv = lax.rsqrt(var + LN_EPS)
    return (x - mean) * inv * gamma + beta


def _mm(a_f32, w_bf16):
    """f32 activations x bf16 weights on the MXU, f32 accumulation."""
    return jnp.dot(a_f32.astype(jnp.bfloat16), w_bf16,
                   preferred_element_type=jnp.float32)


def transformer_block_kernel(x_ref,
                             ln1_g_ref, ln1_b_ref,
                             wqkv_ref, bqkv_ref,
                             wo_ref, bo_ref,
                             ln2_g_ref, ln2_b_ref,
                             w1_ref, b1_ref,
                             w2_ref, b2_ref,
                             out_ref):
    bt, t, d = x_ref.shape
    n = bt * t

    # fold batch into the matmul M dimension (leading-dim reshape only)
    x2d = x_ref[...].reshape(n, d)

    # ---- LayerNorm 1 (f32) ----
    ln1_o = _layernorm(x2d, ln1_g_ref[...], ln1_b_ref[...])

    # ---- fused QKV projection over all Bt*T rows ----
    qkv = _mm(ln1_o, wqkv_ref[...]) + bqkv_ref[...]
    # single full-width cast; per-head slices below read bf16 directly
    qkv_bf = qkv.astype(jnp.bfloat16)

    # ---- causal mask, built once per grid step (additive, f32) ----
    row = lax.broadcasted_iota(jnp.int32, (1, t, t), 1)
    col = lax.broadcasted_iota(jnp.int32, (1, t, t), 2)
    neg_mask = jnp.where(col > row, -1e30, 0.0).astype(jnp.float32)  # (1, T, T)

    scale = 1.0 / (HEAD_DIM ** 0.5)
    wo_bf = wo_ref[...]  # bf16 (pre-cast in wrapper)

    # ---- attention: batched over the Bt sequences, unrolled over heads ----
    # Head concat is folded into the output projection: each head contributes
    # a lane-dense (n, D) partial product, accumulated in f32. No VMEM scratch,
    # no 16-lane masked stores.
    # TODO(synk): a single dot_general batched over heads needs a
    # (N, H, hd) -> (H, N, hd) relayout that Mosaic transpose lowering does not
    # reliably support; keep an unrolled head loop of sequence-batched,
    # transpose-free matmuls instead.
    attn_proj = jnp.zeros((n, d), jnp.float32)
    for h in range(NUM_HEADS):
        lo = h * HEAD_DIM
        q_h = qkv_bf[:, lo:lo + HEAD_DIM].reshape(bt, t, HEAD_DIM)
        k_h = qkv_bf[:, d + lo:d + lo + HEAD_DIM].reshape(bt, t, HEAD_DIM)
        v_h = qkv_bf[:, 2 * d + lo:2 * d + lo + HEAD_DIM].reshape(bt, t, HEAD_DIM)

        # scores: (Bt, T, T), q @ k^T without an explicit transpose op
        s = jnp.einsum('bqd,bkd->bqk', q_h, k_h,
                       preferred_element_type=jnp.float32) * scale
        s = s + neg_mask
        s = s - jnp.max(s, axis=-1, keepdims=True)
        p = jnp.exp(s)                                  # f32
        denom = jnp.sum(p, axis=-1, keepdims=True)      # (Bt, T, 1)

        o_h = jnp.einsum('bqk,bkd->bqd', p.astype(jnp.bfloat16), v_h,
                         preferred_element_type=jnp.float32)
        # deferred softmax normalization: scale the (T, hd) output, not (T, T) probs
        o_h = o_h * pl.reciprocal(denom, approx=True)

        # fold head-concat into the out-projection (lane-dense accumulate)
        attn_proj = attn_proj + jnp.dot(
            o_h.reshape(n, HEAD_DIM).astype(jnp.bfloat16),
            wo_bf[lo:lo + HEAD_DIM, :],
            preferred_element_type=jnp.float32)

    # ---- output projection bias + residual ----
    mmha_o = x2d + attn_proj + bo_ref[...]

    # ---- LayerNorm 2 + feed-forward + residual ----
    ln2_o = _layernorm(mmha_o, ln2_g_ref[...], ln2_b_ref[...])
    h1 = jnp.maximum(_mm(ln2_o, w1_ref[...]) + b1_ref[...], 0.0)
    h2 = _mm(h1, w2_ref[...]) + b2_ref[...]
    # Dropout(p=0.1) is identity at inference time.
    out_ref[...] = (mmha_o + h2).reshape(bt, t, d)


def _largest_divisor_at_most(n, cap):
    cap = max(1, min(n, cap))
    for dd in range(cap, 0, -1):
        if n % dd == 0:
            return dd
    return 1


def transformer_block(x, params):
    B, T, D = x.shape
    assert D == D_MODEL

    # Fold enough sequences per grid step that the dense matmuls see a large M
    # (target ~1024 rows), while keeping per-head (bt, T, T) score tensors a
    # few MiB at most.
    rows_cap = max(1, MAX_ROWS_PER_BLOCK // T)
    score_cap = max(1, SCORE_BYTES_BUDGET // max(1, T * T * 4))
    bt = _largest_divisor_at_most(B, min(rows_cap, score_cap))
    # v7x has 2 TensorCores: make sure the parallel grid has >= 2 steps when
    # there is more than one sequence, so both cores get work.
    if B >= 2 and bt == B:
        bt = _largest_divisor_at_most(B, B // 2)
    grid = (B // bt,)

    # Pre-cast weight matrices (not biases / LN params) to bf16 once:
    # halves weight DMA and feeds the MXU its native dtype; accumulation is f32.
    wqkv = params["wqkv"].astype(jnp.bfloat16)
    wo = params["wo"].astype(jnp.bfloat16)
    w1 = params["w1"].astype(jnp.bfloat16)
    w2 = params["w2"].astype(jnp.bfloat16)

    def full_spec(shape):
        return pl.BlockSpec(shape, lambda b, _s=shape: tuple(0 for _ in _s))

    in_specs = [
        pl.BlockSpec((bt, T, D), lambda b: (b, 0, 0)),    # x
        full_spec((1, D)), full_spec((1, D)),             # ln1 gamma/beta
        full_spec((D, 3 * D)), full_spec((1, 3 * D)),     # qkv weight / bias
        full_spec((D, D)), full_spec((1, D)),             # out-proj weight / bias
        full_spec((1, D)), full_spec((1, D)),             # ln2 gamma/beta
        full_spec((D, D)), full_spec((1, D)),             # ffwd linear1
        full_spec((D, D)), full_spec((1, D)),             # ffwd linear2
    ]

    return pl.pallas_call(
        transformer_block_kernel,
        out_shape=jax.ShapeDtypeStruct((B, T, D), jnp.float32),
        grid_spec=pltpu.PrefetchScalarGridSpec(
            num_scalar_prefetch=0,
            grid=grid,
            in_specs=in_specs,
            out_specs=pl.BlockSpec((bt, T, D), lambda b: (b, 0, 0)),
        ),
        compiler_params=pltpu.CompilerParams(
            dimension_semantics=("parallel",),
            vmem_limit_bytes=32 * 1024 * 1024,
        ),
    )(x,
      params["ln1_g"], params["ln1_b"],
      wqkv, params["bqkv"],
      wo, params["bo"],
      params["ln2_g"], params["ln2_b"],
      w1, params["b1"],
      w2, params["b2"])


def make_params(key):
    """Deterministic synthetic parameters matching nn.MultiheadAttention /
    nn.LayerNorm / nn.Linear shapes (weights pre-transposed to (in, out))."""
    ks = jax.random.split(key, 8)
    s = 0.02
    D = D_MODEL
    return {
        "ln1_g": jnp.ones((1, D), jnp.float32),
        "ln1_b": jnp.zeros((1, D), jnp.float32),
        # PyTorch in_proj_weight is (3D, D); store transposed (D, 3D).
        "wqkv": s * jax.random.normal(ks[0], (D, 3 * D), jnp.float32),
        "bqkv": s * jax.random.normal(ks[1], (1, 3 * D), jnp.float32),
        "wo": s * jax.random.normal(ks[2], (D, D), jnp.float32),
        "bo": s * jax.random.normal(ks[3], (1, D), jnp.float32),
        "ln2_g": jnp.ones((1, D), jnp.float32),
        "ln2_b": jnp.zeros((1, D), jnp.float32),
        "w1": s * jax.random.normal(ks[4], (D, D), jnp.float32),
        "b1": s * jax.random.normal(ks[5], (1, D), jnp.float32),
        "w2": s * jax.random.normal(ks[6], (D, D), jnp.float32),
        "b2": s * jax.random.normal(ks[7], (1, D), jnp.float32),
    }


def reference_transformer_block(x, p):
    """Pure-JAX f32 reference matching the PyTorch forward (eval mode)."""
    def ln(v, g, b):
        m = jnp.mean(v, axis=-1, keepdims=True)
        var = jnp.mean((v - m) ** 2, axis=-1, keepdims=True)
        return (v - m) * lax.rsqrt(var + LN_EPS) * g + b

    B, T, D = x.shape
    ln1_o = ln(x, p["ln1_g"], p["ln1_b"])
    qkv = ln1_o @ p["wqkv"] + p["bqkv"]
    q, k, v = qkv[..., :D], qkv[..., D:2 * D], qkv[..., 2 * D:]
    qh = q.reshape(B, T, NUM_HEADS, HEAD_DIM)
    kh = k.reshape(B, T, NUM_HEADS, HEAD_DIM)
    vh = v.reshape(B, T, NUM_HEADS, HEAD_DIM)
    s = jnp.einsum("bthd,bshd->bhts", qh, kh) / (HEAD_DIM ** 0.5)
    mask = jnp.triu(jnp.ones((T, T), bool), k=1)
    s = jnp.where(mask, -1e30, s)
    pr = jax.nn.softmax(s, axis=-1)
    o = jnp.einsum("bhts,bshd->bthd", pr, vh).reshape(B, T, D)
    attn_out = o @ p["wo"] + p["bo"]
    mmha_o = x + attn_out
    ln2_o = ln(mmha_o, p["ln2_g"], p["ln2_b"])
    h = jnp.maximum(ln2_o @ p["w1"] + p["b1"], 0.0) @ p["w2"] + p["b2"]
    return mmha_o + h


if __name__ == "__main__":
    key = jax.random.PRNGKey(0)
    kx, kp = jax.random.split(key)

    B, T = 2, 8
    x = jax.random.normal(kx, (B, T, D_MODEL), jnp.float32)
    params = make_params(kp)

    out = jax.block_until_ready(transformer_block(x, params))
    ref = reference_transformer_block(x, params)

    assert out.shape == (B, T, D_MODEL)
    # bf16 MXU operands (f32 accumulation) -> slightly looser tolerance than pure f32
    assert jnp.allclose(out, ref, atol=2e-2, rtol=2e-2), "mismatch vs reference"

    print("KERNEL_OK")
</pallas_src>

<mosaic_0001>
module attributes {stable_mosaic.version = 11 : i64} {
  func.func @transformer_block_kernel(%arg0: i32, %arg1: memref<1x8x128xf32, #tpu.memory_space<vmem>>, %arg2: memref<1x128xf32, #tpu.memory_space<vmem>>, %arg3: memref<1x128xf32, #tpu.memory_space<vmem>>, %arg4: memref<128x384xbf16, #tpu.memory_space<vmem>>, %arg5: memref<1x384xf32, #tpu.memory_space<vmem>>, %arg6: memref<128x128xbf16, #tpu.memory_space<vmem>>, %arg7: memref<1x128xf32, #tpu.memory_space<vmem>>, %arg8: memref<1x128xf32, #tpu.memory_space<vmem>>, %arg9: memref<1x128xf32, #tpu.memory_space<vmem>>, %arg10: memref<128x128xbf16, #tpu.memory_space<vmem>>, %arg11: memref<1x128xf32, #tpu.memory_space<vmem>>, %arg12: memref<128x128xbf16, #tpu.memory_space<vmem>>, %arg13: memref<1x128xf32, #tpu.memory_space<vmem>>, %arg14: memref<1x8x128xf32, #tpu.memory_space<vmem>>) attributes {dimension_semantics = [#tpu.dimension_semantics<parallel>], iteration_bounds = array<i64: 2>, scalar_prefetch = 0 : i64, scratch_operands = 0 : i64, tpu.core_type = #tpu.core_type<tc>, window_params = [{transform_indices = @transform_0, window_bounds = array<i64: 1, 8, 128>}, {pipeline_mode = #tpu.pipeline_mode<synchronous>, transform_indices = @transform_1, window_bounds = array<i64: 1, 128>}, {pipeline_mode = #tpu.pipeline_mode<synchronous>, transform_indices = @transform_2, window_bounds = array<i64: 1, 128>}, {pipeline_mode = #tpu.pipeline_mode<synchronous>, transform_indices = @transform_3, window_bounds = array<i64: 128, 384>}, {pipeline_mode = #tpu.pipeline_mode<synchronous>, transform_indices = @transform_4, window_bounds = array<i64: 1, 384>}, {pipeline_mode = #tpu.pipeline_mode<synchronous>, transform_indices = @transform_5, window_bounds = array<i64: 128, 128>}, {pipeline_mode = #tpu.pipeline_mode<synchronous>, transform_indices = @transform_6, window_bounds = array<i64: 1, 128>}, {pipeline_mode = #tpu.pipeline_mode<synchronous>, transform_indices = @transform_7, window_bounds = array<i64: 1, 128>}, {pipeline_mode = #tpu.pipeline_mode<synchronous>, transform_indices = @transform_8, window_bounds = array<i64: 1, 128>}, {pipeline_mode = #tpu.pipeline_mode<synchronous>, transform_indices = @transform_9, window_bounds = array<i64: 128, 128>}, {pipeline_mode = #tpu.pipeline_mode<synchronous>, transform_indices = @transform_10, window_bounds = array<i64: 1, 128>}, {pipeline_mode = #tpu.pipeline_mode<synchronous>, transform_indices = @transform_11, window_bounds = array<i64: 128, 128>}, {pipeline_mode = #tpu.pipeline_mode<synchronous>, transform_indices = @transform_12, window_bounds = array<i64: 1, 128>}, {transform_indices = @transform_13, window_bounds = array<i64: 1, 8, 128>}]} {
    %c0 = arith.constant 0 : index
    %c0_0 = arith.constant 0 : index
    %c0_1 = arith.constant 0 : index
    %0 = vector.load %arg1[%c0, %c0_0, %c0_1] : memref<1x8x128xf32, #tpu.memory_space<vmem>>, vector<1x8x128xf32>
    %1 = vector.shape_cast %0 : vector<1x8x128xf32> to vector<8x128xf32>
    %c0_2 = arith.constant 0 : index
    %c0_3 = arith.constant 0 : index
    %2 = vector.load %arg2[%c0_2, %c0_3] : memref<1x128xf32, #tpu.memory_space<vmem>>, vector<1x128xf32>
    %c0_4 = arith.constant 0 : index
    %c0_5 = arith.constant 0 : index
    %3 = vector.load %arg3[%c0_4, %c0_5] : memref<1x128xf32, #tpu.memory_space<vmem>>, vector<1x128xf32>
    %cst = arith.constant dense<0.000000e+00> : vector<8xf32>
    %4 = vector.multi_reduction <add>, %1, %cst [1] : vector<8x128xf32> to vector<8xf32>
    %5 = vector.shape_cast %4 : vector<8xf32> to vector<8x1xf32>
    %cst_6 = arith.constant 1.280000e+02 : f32
    %6 = vector.broadcast %cst_6 : f32 to vector<8x1xf32>
    %7 = arith.divf %5, %6 : vector<8x1xf32>
    %8 = vector.broadcast %7 : vector<8x1xf32> to vector<8x128xf32>
    %9 = arith.subf %1, %8 : vector<8x128xf32>
    %10 = arith.mulf %9, %9 : vector<8x128xf32>
    %cst_7 = arith.constant dense<0.000000e+00> : vector<8xf32>
    %11 = vector.multi_reduction <add>, %10, %cst_7 [1] : vector<8x128xf32> to vector<8xf32>
    %12 = vector.shape_cast %11 : vector<8xf32> to vector<8x1xf32>
    %cst_8 = arith.constant 1.280000e+02 : f32
    %13 = vector.broadcast %cst_8 : f32 to vector<8x1xf32>
    %14 = arith.divf %12, %13 : vector<8x1xf32>
    %cst_9 = arith.constant 9.99999974E-6 : f32
    %15 = vector.broadcast %cst_9 : f32 to vector<8x1xf32>
    %16 = arith.addf %14, %15 : vector<8x1xf32>
    %17 = math.rsqrt %16 : vector<8x1xf32>
    %18 = vector.broadcast %7 : vector<8x1xf32> to vector<8x128xf32>
    %19 = arith.subf %1, %18 : vector<8x128xf32>
    %20 = vector.broadcast %17 : vector<8x1xf32> to vector<8x128xf32>
    %21 = arith.mulf %19, %20 : vector<8x128xf32>
    %22 = vector.broadcast %2 : vector<1x128xf32> to vector<8x128xf32>
    %23 = arith.mulf %21, %22 : vector<8x128xf32>
    %24 = vector.broadcast %3 : vector<1x128xf32> to vector<8x128xf32>
    %25 = arith.addf %23, %24 : vector<8x128xf32>
    %c0_10 = arith.constant 0 : index
    %c0_11 = arith.constant 0 : index
    %26 = vector.load %arg4[%c0_10, %c0_11] : memref<128x384xbf16, #tpu.memory_space<vmem>>, vector<128x384xbf16>
    %27 = arith.truncf %25 : vector<8x128xf32> to vector<8x128xbf16>
    %cst_12 = arith.constant dense<0.000000e+00> : vector<8x384xf32>
    %28 = tpu.matmul %27, %26, %cst_12 {dimension_numbers = #tpu.dot_dimension_numbers<[1], [0], [0], [1], [0, 0, 1, 1], [], []>} : vector<8x128xbf16>, vector<128x384xbf16>, vector<8x384xf32> -> vector<8x384xf32>
    %c0_13 = arith.constant 0 : index
    %c0_14 = arith.constant 0 : index
    %29 = vector.load %arg5[%c0_13, %c0_14] : memref<1x384xf32, #tpu.memory_space<vmem>>, vector<1x384xf32>
    %30 = vector.broadcast %29 : vector<1x384xf32> to vector<8x384xf32>
    %31 = arith.addf %28, %30 : vector<8x384xf32>
    %32 = arith.truncf %31 : vector<8x384xf32> to vector<8x384xbf16>
    %33 = tpu.iota {dimensions = array<i32: 1>} : vector<1x8x8xi32>
    %34 = tpu.iota {dimensions = array<i32: 2>} : vector<1x8x8xi32>
    %35 = arith.cmpi sgt, %34, %33 : vector<1x8x8xi32>
    %cst_15 = arith.constant -1.000000e+30 : f32
    %cst_16 = arith.constant 0.000000e+00 : f32
    %36 = vector.broadcast %cst_15 : f32 to vector<1x8x8xf32>
    %37 = vector.broadcast %cst_16 : f32 to vector<1x8x8xf32>
    %38 = arith.select %35, %36, %37 : vector<1x8x8xi1>, vector<1x8x8xf32>
    %c0_17 = arith.constant 0 : index
    %c0_18 = arith.constant 0 : index
    %39 = vector.load %arg6[%c0_17, %c0_18] : memref<128x128xbf16, #tpu.memory_space<vmem>>, vector<128x128xbf16>
    %cst_19 = arith.constant 0.000000e+00 : f32
    %40 = vector.broadcast %cst_19 : f32 to vector<8x128xf32>
    %41 = vector.extract_strided_slice %32 {offsets = [0, 0], sizes = [8, 16], strides = [1, 1]} : vector<8x384xbf16> to vector<8x16xbf16>
    %42 = vector.shape_cast %41 : vector<8x16xbf16> to vector<1x8x16xbf16>
    %43 = vector.extract_strided_slice %32 {offsets = [0, 128], sizes = [8, 16], strides = [1, 1]} : vector<8x384xbf16> to vector<8x16xbf16>
    %44 = vector.shape_cast %43 : vector<8x16xbf16> to vector<1x8x16xbf16>
    %45 = vector.extract_strided_slice %32 {offsets = [0, 256], sizes = [8, 16], strides = [1, 1]} : vector<8x384xbf16> to vector<8x16xbf16>
    %46 = vector.shape_cast %45 : vector<8x16xbf16> to vector<1x8x16xbf16>
    "tpu.trace_start"() <{level = 10 : i32, message = "bqd,bkd->bqk"}> : () -> ()
    %cst_20 = arith.constant dense<0.000000e+00> : vector<1x8x8xf32>
    %47 = tpu.matmul %42, %44, %cst_20 {dimension_numbers = #tpu.dot_dimension_numbers<[2], [2], [1], [1], [0, 0, 0, 1, 1, 1], [0], [0]>} : vector<1x8x16xbf16>, vector<1x8x16xbf16>, vector<1x8x8xf32> -> vector<1x8x8xf32>
    "tpu.trace_stop"() : () -> ()
    %cst_21 = arith.constant 2.500000e-01 : f32
    %48 = vector.broadcast %cst_21 : f32 to vector<1x8x8xf32>
    %49 = arith.mulf %47, %48 : vector<1x8x8xf32>
    %50 = arith.addf %49, %38 : vector<1x8x8xf32>
    %cst_22 = arith.constant dense<0xFF800000> : vector<1x8xf32>
    %51 = vector.multi_reduction <maximumf>, %50, %cst_22 [2] : vector<1x8x8xf32> to vector<1x8xf32>
    %52 = vector.shape_cast %51 : vector<1x8xf32> to vector<1x8x1xf32>
    %53 = vector.broadcast %52 : vector<1x8x1xf32> to vector<1x8x8xf32>
    %54 = arith.subf %50, %53 : vector<1x8x8xf32>
    %55 = math.exp %54 : vector<1x8x8xf32>
    %cst_23 = arith.constant dense<0.000000e+00> : vector<1x8xf32>
    %56 = vector.multi_reduction <add>, %55, %cst_23 [2] : vector<1x8x8xf32> to vector<1x8xf32>
    %57 = vector.shape_cast %56 : vector<1x8xf32> to vector<1x8x1xf32>
    %58 = arith.truncf %55 : vector<1x8x8xf32> to vector<1x8x8xbf16>
    "tpu.trace_start"() <{level = 10 : i32, message = "bqk,bkd->bqd"}> : () -> ()
    %cst_24 = arith.constant dense<0.000000e+00> : vector<1x8x16xf32>
    %59 = tpu.matmul %58, %46, %cst_24 {dimension_numbers = #tpu.dot_dimension_numbers<[2], [1], [1], [2], [0, 0, 0, 1, 1, 2], [0], [0]>} : vector<1x8x8xbf16>, vector<1x8x16xbf16>, vector<1x8x16xf32> -> vector<1x8x16xf32>
    "tpu.trace_stop"() : () -> ()
    %60 = tpu.reciprocal %57 {approx = true} : vector<1x8x1xf32> -> vector<1x8x1xf32>
    %61 = vector.broadcast %60 : vector<1x8x1xf32> to vector<1x8x16xf32>
    %62 = arith.mulf %59, %61 : vector<1x8x16xf32>
    %63 = vector.shape_cast %62 : vector<1x8x16xf32> to vector<8x16xf32>
    %64 = arith.truncf %63 : vector<8x16xf32> to vector<8x16xbf16>
    %65 = vector.extract_strided_slice %39 {offsets = [0, 0], sizes = [16, 128], strides = [1, 1]} : vector<128x128xbf16> to vector<16x128xbf16>
    %cst_25 = arith.constant dense<0.000000e+00> : vector<8x128xf32>
    %66 = tpu.matmul %64, %65, %cst_25 {dimension_numbers = #tpu.dot_dimension_numbers<[1], [0], [0], [1], [0, 0, 1, 1], [], []>} : vector<8x16xbf16>, vector<16x128xbf16>, vector<8x128xf32> -> vector<8x128xf32>
    %67 = arith.addf %40, %66 : vector<8x128xf32>
    %68 = vector.extract_strided_slice %32 {offsets = [0, 16], sizes = [8, 16], strides = [1, 1]} : vector<8x384xbf16> to vector<8x16xbf16>
    %69 = vector.shape_cast %68 : vector<8x16xbf16> to vector<1x8x16xbf16>
    %70 = vector.extract_strided_slice %32 {offsets = [0, 144], sizes = [8, 16], strides = [1, 1]} : vector<8x384xbf16> to vector<8x16xbf16>
    %71 = vector.shape_cast %70 : vector<8x16xbf16> to vector<1x8x16xbf16>
    %72 = vector.extract_strided_slice %32 {offsets = [0, 272], sizes = [8, 16], strides = [1, 1]} : vector<8x384xbf16> to vector<8x16xbf16>
    %73 = vector.shape_cast %72 : vector<8x16xbf16> to vector<1x8x16xbf16>
    "tpu.trace_start"() <{level = 10 : i32, message = "bqd,bkd->bqk"}> : () -> ()
    %cst_26 = arith.constant dense<0.000000e+00> : vector<1x8x8xf32>
    %74 = tpu.matmul %69, %71, %cst_26 {dimension_numbers = #tpu.dot_dimension_numbers<[2], [2], [1], [1], [0, 0, 0, 1, 1, 1], [0], [0]>} : vector<1x8x16xbf16>, vector<1x8x16xbf16>, vector<1x8x8xf32> -> vector<1x8x8xf32>
    "tpu.trace_stop"() : () -> ()
    %cst_27 = arith.constant 2.500000e-01 : f32
    %75 = vector.broadcast %cst_27 : f32 to vector<1x8x8xf32>
    %76 = arith.mulf %74, %75 : vector<1x8x8xf32>
    %77 = arith.addf %76, %38 : vector<1x8x8xf32>
    %cst_28 = arith.constant dense<0xFF800000> : vector<1x8xf32>
    %78 = vector.multi_reduction <maximumf>, %77, %cst_28 [2] : vector<1x8x8xf32> to vector<1x8xf32>
    %79 = vector.shape_cast %78 : vector<1x8xf32> to vector<1x8x1xf32>
    %80 = vector.broadcast %79 : vector<1x8x1xf32> to vector<1x8x8xf32>
    %81 = arith.subf %77, %80 : vector<1x8x8xf32>
    %82 = math.exp %81 : vector<1x8x8xf32>
    %cst_29 = arith.constant dense<0.000000e+00> : vector<1x8xf32>
    %83 = vector.multi_reduction <add>, %82, %cst_29 [2] : vector<1x8x8xf32> to vector<1x8xf32>
    %84 = vector.shape_cast %83 : vector<1x8xf32> to vector<1x8x1xf32>
    %85 = arith.truncf %82 : vector<1x8x8xf32> to vector<1x8x8xbf16>
    "tpu.trace_start"() <{level = 10 : i32, message = "bqk,bkd->bqd"}> : () -> ()
    %cst_30 = arith.constant dense<0.000000e+00> : vector<1x8x16xf32>
    %86 = tpu.matmul %85, %73, %cst_30 {dimension_numbers = #tpu.dot_dimension_numbers<[2], [1], [1], [2], [0, 0, 0, 1, 1, 2], [0], [0]>} : vector<1x8x8xbf16>, vector<1x8x16xbf16>, vector<1x8x16xf32> -> vector<1x8x16xf32>
    "tpu.trace_stop"() : () -> ()
    %87 = tpu.reciprocal %84 {approx = true} : vector<1x8x1xf32> -> vector<1x8x1xf32>
    %88 = vector.broadcast %87 : vector<1x8x1xf32> to vector<1x8x16xf32>
    %89 = arith.mulf %86, %88 : vector<1x8x16xf32>
    %90 = vector.shape_cast %89 : vector<1x8x16xf32> to vector<8x16xf32>
    %91 = arith.truncf %90 : vector<8x16xf32> to vector<8x16xbf16>
    %92 = vector.extract_strided_slice %39 {offsets = [16, 0], sizes = [16, 128], strides = [1, 1]} : vector<128x128xbf16> to vector<16x128xbf16>
    %cst_31 = arith.constant dense<0.000000e+00> : vector<8x128xf32>
    %93 = tpu.matmul %91, %92, %cst_31 {dimension_numbers = #tpu.dot_dimension_numbers<[1], [0], [0], [1], [0, 0, 1, 1], [], []>} : vector<8x16xbf16>, vector<16x128xbf16>, vector<8x128xf32> -> vector<8x128xf32>
    %94 = arith.addf %67, %93 : vector<8x128xf32>
    %95 = vector.extract_strided_slice %32 {offsets = [0, 32], sizes = [8, 16], strides = [1, 1]} : vector<8x384xbf16> to vector<8x16xbf16>
    %96 = vector.shape_cast %95 : vector<8x16xbf16> to vector<1x8x16xbf16>
    %97 = vector.extract_strided_slice %32 {offsets = [0, 160], sizes = [8, 16], strides = [1, 1]} : vector<8x384xbf16> to vector<8x16xbf16>
    %98 = vector.shape_cast %97 : vector<8x16xbf16> to vector<1x8x16xbf16>
    %99 = vector.extract_strided_slice %32 {offsets = [0, 288], sizes = [8, 16], strides = [1, 1]} : vector<8x384xbf16> to vector<8x16xbf16>
    %100 = vector.shape_cast %99 : vector<8x16xbf16> to vector<1x8x16xbf16>
    "tpu.trace_start"() <{level = 10 : i32, message = "bqd,bkd->bqk"}> : () -> ()
    %cst_32 = arith.constant dense<0.000000e+00> : vector<1x8x8xf32>
    %101 = tpu.matmul %96, %98, %cst_32 {dimension_numbers = #tpu.dot_dimension_numbers<[2], [2], [1], [1], [0, 0, 0, 1, 1, 1], [0], [0]>} : vector<1x8x16xbf16>, vector<1x8x16xbf16>, vector<1x8x8xf32> -> vector<1x8x8xf32>
    "tpu.trace_stop"() : () -> ()
    %cst_33 = arith.constant 2.500000e-01 : f32
    %102 = vector.broadcast %cst_33 : f32 to vector<1x8x8xf32>
    %103 = arith.mulf %101, %102 : vector<1x8x8xf32>
    %104 = arith.addf %103, %38 : vector<1x8x8xf32>
    %cst_34 = arith.constant dense<0xFF800000> : vector<1x8xf32>
    %105 = vector.multi_reduction <maximumf>, %104, %cst_34 [2] : vector<1x8x8xf32> to vector<1x8xf32>
    %106 = vector.shape_cast %105 : vector<1x8xf32> to vector<1x8x1xf32>
    %107 = vector.broadcast %106 : vector<1x8x1xf32> to vector<1x8x8xf32>
    %108 = arith.subf %104, %107 : vector<1x8x8xf32>
    %109 = math.exp %108 : vector<1x8x8xf32>
    %cst_35 = arith.constant dense<0.000000e+00> : vector<1x8xf32>
    %110 = vector.multi_reduction <add>, %109, %cst_35 [2] : vector<1x8x8xf32> to vector<1x8xf32>
    %111 = vector.shape_cast %110 : vector<1x8xf32> to vector<1x8x1xf32>
    %112 = arith.truncf %109 : vector<1x8x8xf32> to vector<1x8x8xbf16>
    "tpu.trace_start"() <{level = 10 : i32, message = "bqk,bkd->bqd"}> : () -> ()
    %cst_36 = arith.constant dense<0.000000e+00> : vector<1x8x16xf32>
    %113 = tpu.matmul %112, %100, %cst_36 {dimension_numbers = #tpu.dot_dimension_numbers<[2], [1], [1], [2], [0, 0, 0, 1, 1, 2], [0], [0]>} : vector<1x8x8xbf16>, vector<1x8x16xbf16>, vector<1x8x16xf32> -> vector<1x8x16xf32>
    "tpu.trace_stop"() : () -> ()
    %114 = tpu.reciprocal %111 {approx = true} : vector<1x8x1xf32> -> vector<1x8x1xf32>
    %115 = vector.broadcast %114 : vector<1x8x1xf32> to vector<1x8x16xf32>
    %116 = arith.mulf %113, %115 : vector<1x8x16xf32>
    %117 = vector.shape_cast %116 : vector<1x8x16xf32> to vector<8x16xf32>
    %118 = arith.truncf %117 : vector<8x16xf32> to vector<8x16xbf16>
    %119 = vector.extract_strided_slice %39 {offsets = [32, 0], sizes = [16, 128], strides = [1, 1]} : vector<128x128xbf16> to vector<16x128xbf16>
    %cst_37 = arith.constant dense<0.000000e+00> : vector<8x128xf32>
    %120 = tpu.matmul %118, %119, %cst_37 {dimension_numbers = #tpu.dot_dimension_numbers<[1], [0], [0], [1], [0, 0, 1, 1], [], []>} : vector<8x16xbf16>, vector<16x128xbf16>, vector<8x128xf32> -> vector<8x128xf32>
    %121 = arith.addf %94, %120 : vector<8x128xf32>
    %122 = vector.extract_strided_slice %32 {offsets = [0, 48], sizes = [8, 16], strides = [1, 1]} : vector<8x384xbf16> to vector<8x16xbf16>
    %123 = vector.shape_cast %122 : vector<8x16xbf16> to vector<1x8x16xbf16>
    %124 = vector.extract_strided_slice %32 {offsets = [0, 176], sizes = [8, 16], strides = [1, 1]} : vector<8x384xbf16> to vector<8x16xbf16>
    %125 = vector.shape_cast %124 : vector<8x16xbf16> to vector<1x8x16xbf16>
    %126 = vector.extract_strided_slice %32 {offsets = [0, 304], sizes = [8, 16], strides = [1, 1]} : vector<8x384xbf16> to vector<8x16xbf16>
    %127 = vector.shape_cast %126 : vector<8x16xbf16> to vector<1x8x16xbf16>
    "tpu.trace_start"() <{level = 10 : i32, message = "bqd,bkd->bqk"}> : () -> ()
    %cst_38 = arith.constant dense<0.000000e+00> : vector<1x8x8xf32>
    %128 = tpu.matmul %123, %125, %cst_38 {dimension_numbers = #tpu.dot_dimension_numbers<[2], [2], [1], [1], [0, 0, 0, 1, 1, 1], [0], [0]>} : vector<1x8x16xbf16>, vector<1x8x16xbf16>, vector<1x8x8xf32> -> vector<1x8x8xf32>
    "tpu.trace_stop"() : () -> ()
    %cst_39 = arith.constant 2.500000e-01 : f32
    %129 = vector.broadcast %cst_39 : f32 to vector<1x8x8xf32>
    %130 = arith.mulf %128, %129 : vector<1x8x8xf32>
    %131 = arith.addf %130, %38 : vector<1x8x8xf32>
    %cst_40 = arith.constant dense<0xFF800000> : vector<1x8xf32>
    %132 = vector.multi_reduction <maximumf>, %131, %cst_40 [2] : vector<1x8x8xf32> to vector<1x8xf32>
    %133 = vector.shape_cast %132 : vector<1x8xf32> to vector<1x8x1xf32>
    %134 = vector.broadcast %133 : vector<1x8x1xf32> to vector<1x8x8xf32>
    %135 = arith.subf %131, %134 : vector<1x8x8xf32>
    %136 = math.exp %135 : vector<1x8x8xf32>
    %cst_41 = arith.constant dense<0.000000e+00> : vector<1x8xf32>
    %137 = vector.multi_reduction <add>, %136, %cst_41 [2] : vector<1x8x8xf32> to vector<1x8xf32>
    %138 = vector.shape_cast %137 : vector<1x8xf32> to vector<1x8x1xf32>
    %139 = arith.truncf %136 : vector<1x8x8xf32> to vector<1x8x8xbf16>
    "tpu.trace_start"() <{level = 10 : i32, message = "bqk,bkd->bqd"}> : () -> ()
    %cst_42 = arith.constant dense<0.000000e+00> : vector<1x8x16xf32>
    %140 = tpu.matmul %139, %127, %cst_42 {dimension_numbers = #tpu.dot_dimension_numbers<[2], [1], [1], [2], [0, 0, 0, 1, 1, 2], [0], [0]>} : vector<1x8x8xbf16>, vector<1x8x16xbf16>, vector<1x8x16xf32> -> vector<1x8x16xf32>
    "tpu.trace_stop"() : () -> ()
    %141 = tpu.reciprocal %138 {approx = true} : vector<1x8x1xf32> -> vector<1x8x1xf32>
    %142 = vector.broadcast %141 : vector<1x8x1xf32> to vector<1x8x16xf32>
    %143 = arith.mulf %140, %142 : vector<1x8x16xf32>
    %144 = vector.shape_cast %143 : vector<1x8x16xf32> to vector<8x16xf32>
    %145 = arith.truncf %144 : vector<8x16xf32> to vector<8x16xbf16>
    %146 = vector.extract_strided_slice %39 {offsets = [48, 0], sizes = [16, 128], strides = [1, 1]} : vector<128x128xbf16> to vector<16x128xbf16>
    %cst_43 = arith.constant dense<0.000000e+00> : vector<8x128xf32>
    %147 = tpu.matmul %145, %146, %cst_43 {dimension_numbers = #tpu.dot_dimension_numbers<[1], [0], [0], [1], [0, 0, 1, 1], [], []>} : vector<8x16xbf16>, vector<16x128xbf16>, vector<8x128xf32> -> vector<8x128xf32>
    %148 = arith.addf %121, %147 : vector<8x128xf32>
    %149 = vector.extract_strided_slice %32 {offsets = [0, 64], sizes = [8, 16], strides = [1, 1]} : vector<8x384xbf16> to vector<8x16xbf16>
    %150 = vector.shape_cast %149 : vector<8x16xbf16> to vector<1x8x16xbf16>
    %151 = vector.extract_strided_slice %32 {offsets = [0, 192], sizes = [8, 16], strides = [1, 1]} : vector<8x384xbf16> to vector<8x16xbf16>
    %152 = vector.shape_cast %151 : vector<8x16xbf16> to vector<1x8x16xbf16>
    %153 = vector.extract_strided_slice %32 {offsets = [0, 320], sizes = [8, 16], strides = [1, 1]} : vector<8x384xbf16> to vector<8x16xbf16>
    %154 = vector.shape_cast %153 : vector<8x16xbf16> to vector<1x8x16xbf16>
    "tpu.trace_start"() <{level = 10 : i32, message = "bqd,bkd->bqk"}> : () -> ()
    %cst_44 = arith.constant dense<0.000000e+00> : vector<1x8x8xf32>
    %155 = tpu.matmul %150, %152, %cst_44 {dimension_numbers = #tpu.dot_dimension_numbers<[2], [2], [1], [1], [0, 0, 0, 1, 1, 1], [0], [0]>} : vector<1x8x16xbf16>, vector<1x8x16xbf16>, vector<1x8x8xf32> -> vector<1x8x8xf32>
    "tpu.trace_stop"() : () -> ()
    %cst_45 = arith.constant 2.500000e-01 : f32
    %156 = vector.broadcast %cst_45 : f32 to vector<1x8x8xf32>
    %157 = arith.mulf %155, %156 : vector<1x8x8xf32>
    %158 = arith.addf %157, %38 : vector<1x8x8xf32>
    %cst_46 = arith.constant dense<0xFF800000> : vector<1x8xf32>
    %159 = vector.multi_reduction <maximumf>, %158, %cst_46 [2] : vector<1x8x8xf32> to vector<1x8xf32>
    %160 = vector.shape_cast %159 : vector<1x8xf32> to vector<1x8x1xf32>
    %161 = vector.broadcast %160 : vector<1x8x1xf32> to vector<1x8x8xf32>
    %162 = arith.subf %158, %161 : vector<1x8x8xf32>
    %163 = math.exp %162 : vector<1x8x8xf32>
    %cst_47 = arith.constant dense<0.000000e+00> : vector<1x8xf32>
    %164 = vector.multi_reduction <add>, %163, %cst_47 [2] : vector<1x8x8xf32> to vector<1x8xf32>
    %165 = vector.shape_cast %164 : vector<1x8xf32> to vector<1x8x1xf32>
    %166 = arith.truncf %163 : vector<1x8x8xf32> to vector<1x8x8xbf16>
    "tpu.trace_start"() <{level = 10 : i32, message = "bqk,bkd->bqd"}> : () -> ()
    %cst_48 = arith.constant dense<0.000000e+00> : vector<1x8x16xf32>
    %167 = tpu.matmul %166, %154, %cst_48 {dimension_numbers = #tpu.dot_dimension_numbers<[2], [1], [1], [2], [0, 0, 0, 1, 1, 2], [0], [0]>} : vector<1x8x8xbf16>, vector<1x8x16xbf16>, vector<1x8x16xf32> -> vector<1x8x16xf32>
    "tpu.trace_stop"() : () -> ()
    %168 = tpu.reciprocal %165 {approx = true} : vector<1x8x1xf32> -> vector<1x8x1xf32>
    %169 = vector.broadcast %168 : vector<1x8x1xf32> to vector<1x8x16xf32>
    %170 = arith.mulf %167, %169 : vector<1x8x16xf32>
    %171 = vector.shape_cast %170 : vector<1x8x16xf32> to vector<8x16xf32>
    %172 = arith.truncf %171 : vector<8x16xf32> to vector<8x16xbf16>
    %173 = vector.extract_strided_slice %39 {offsets = [64, 0], sizes = [16, 128], strides = [1, 1]} : vector<128x128xbf16> to vector<16x128xbf16>
    %cst_49 = arith.constant dense<0.000000e+00> : vector<8x128xf32>
    %174 = tpu.matmul %172, %173, %cst_49 {dimension_numbers = #tpu.dot_dimension_numbers<[1], [0], [0], [1], [0, 0, 1, 1], [], []>} : vector<8x16xbf16>, vector<16x128xbf16>, vector<8x128xf32> -> vector<8x128xf32>
    %175 = arith.addf %148, %174 : vector<8x128xf32>
    %176 = vector.extract_strided_slice %32 {offsets = [0, 80], sizes = [8, 16], strides = [1, 1]} : vector<8x384xbf16> to vector<8x16xbf16>
    %177 = vector.shape_cast %176 : vector<8x16xbf16> to vector<1x8x16xbf16>
    %178 = vector.extract_strided_slice %32 {offsets = [0, 208], sizes = [8, 16], strides = [1, 1]} : vector<8x384xbf16> to vector<8x16xbf16>
    %179 = vector.shape_cast %178 : vector<8x16xbf16> to vector<1x8x16xbf16>
    %180 = vector.extract_strided_slice %32 {offsets = [0, 336], sizes = [8, 16], strides = [1, 1]} : vector<8x384xbf16> to vector<8x16xbf16>
    %181 = vector.shape_cast %180 : vector<8x16xbf16> to vector<1x8x16xbf16>
    "tpu.trace_start"() <{level = 10 : i32, message = "bqd,bkd->bqk"}> : () -> ()
    %cst_50 = arith.constant dense<0.000000e+00> : vector<1x8x8xf32>
    %182 = tpu.matmul %177, %179, %cst_50 {dimension_numbers = #tpu.dot_dimension_numbers<[2], [2], [1], [1], [0, 0, 0, 1, 1, 1], [0], [0]>} : vector<1x8x16xbf16>, vector<1x8x16xbf16>, vector<1x8x8xf32> -> vector<1x8x8xf32>
    "tpu.trace_stop"() : () -> ()
    %cst_51 = arith.constant 2.500000e-01 : f32
    %183 = vector.broadcast %cst_51 : f32 to vector<1x8x8xf32>
    %184 = arith.mulf %182, %183 : vector<1x8x8xf32>
    %185 = arith.addf %184, %38 : vector<1x8x8xf32>
    %cst_52 = arith.constant dense<0xFF800000> : vector<1x8xf32>
    %186 = vector.multi_reduction <maximumf>, %185, %cst_52 [2] : vector<1x8x8xf32> to vector<1x8xf32>
    %187 = vector.shape_cast %186 : vector<1x8xf32> to vector<1x8x1xf32>
    %188 = vector.broadcast %187 : vector<1x8x1xf32> to vector<1x8x8xf32>
    %189 = arith.subf %185, %188 : vector<1x8x8xf32>
    %190 = math.exp %189 : vector<1x8x8xf32>
    %cst_53 = arith.constant dense<0.000000e+00> : vector<1x8xf32>
    %191 = vector.multi_reduction <add>, %190, %cst_53 [2] : vector<1x8x8xf32> to vector<1x8xf32>
    %192 = vector.shape_cast %191 : vector<1x8xf32> to vector<1x8x1xf32>
    %193 = arith.truncf %190 : vector<1x8x8xf32> to vector<1x8x8xbf16>
    "tpu.trace_start"() <{level = 10 : i32, message = "bqk,bkd->bqd"}> : () -> ()
    %cst_54 = arith.constant dense<0.000000e+00> : vector<1x8x16xf32>
    %194 = tpu.matmul %193, %181, %cst_54 {dimension_numbers = #tpu.dot_dimension_numbers<[2], [1], [1], [2], [0, 0, 0, 1, 1, 2], [0], [0]>} : vector<1x8x8xbf16>, vector<1x8x16xbf16>, vector<1x8x16xf32> -> vector<1x8x16xf32>
    "tpu.trace_stop"() : () -> ()
    %195 = tpu.reciprocal %192 {approx = true} : vector<1x8x1xf32> -> vector<1x8x1xf32>
    %196 = vector.broadcast %195 : vector<1x8x1xf32> to vector<1x8x16xf32>
    %197 = arith.mulf %194, %196 : vector<1x8x16xf32>
    %198 = vector.shape_cast %197 : vector<1x8x16xf32> to vector<8x16xf32>
    %199 = arith.truncf %198 : vector<8x16xf32> to vector<8x16xbf16>
    %200 = vector.extract_strided_slice %39 {offsets = [80, 0], sizes = [16, 128], strides = [1, 1]} : vector<128x128xbf16> to vector<16x128xbf16>
    %cst_55 = arith.constant dense<0.000000e+00> : vector<8x128xf32>
    %201 = tpu.matmul %199, %200, %cst_55 {dimension_numbers = #tpu.dot_dimension_numbers<[1], [0], [0], [1], [0, 0, 1, 1], [], []>} : vector<8x16xbf16>, vector<16x128xbf16>, vector<8x128xf32> -> vector<8x128xf32>
    %202 = arith.addf %175, %201 : vector<8x128xf32>
    %203 = vector.extract_strided_slice %32 {offsets = [0, 96], sizes = [8, 16], strides = [1, 1]} : vector<8x384xbf16> to vector<8x16xbf16>
    %204 = vector.shape_cast %203 : vector<8x16xbf16> to vector<1x8x16xbf16>
    %205 = vector.extract_strided_slice %32 {offsets = [0, 224], sizes = [8, 16], strides = [1, 1]} : vector<8x384xbf16> to vector<8x16xbf16>
    %206 = vector.shape_cast %205 : vector<8x16xbf16> to vector<1x8x16xbf16>
    %207 = vector.extract_strided_slice %32 {offsets = [0, 352], sizes = [8, 16], strides = [1, 1]} : vector<8x384xbf16> to vector<8x16xbf16>
    %208 = vector.shape_cast %207 : vector<8x16xbf16> to vector<1x8x16xbf16>
    "tpu.trace_start"() <{level = 10 : i32, message = "bqd,bkd->bqk"}> : () -> ()
    %cst_56 = arith.constant dense<0.000000e+00> : vector<1x8x8xf32>
    %209 = tpu.matmul %204, %206, %cst_56 {dimension_numbers = #tpu.dot_dimension_numbers<[2], [2], [1], [1], [0, 0, 0, 1, 1, 1], [0], [0]>} : vector<1x8x16xbf16>, vector<1x8x16xbf16>, vector<1x8x8xf32> -> vector<1x8x8xf32>
    "tpu.trace_stop"() : () -> ()
    %cst_57 = arith.constant 2.500000e-01 : f32
    %210 = vector.broadcast %cst_57 : f32 to vector<1x8x8xf32>
    %211 = arith.mulf %209, %210 : vector<1x8x8xf32>
    %212 = arith.addf %211, %38 : vector<1x8x8xf32>
    %cst_58 = arith.constant dense<0xFF800000> : vector<1x8xf32>
    %213 = vector.multi_reduction <maximumf>, %212, %cst_58 [2] : vector<1x8x8xf32> to vector<1x8xf32>
    %214 = vector.shape_cast %213 : vector<1x8xf32> to vector<1x8x1xf32>
    %215 = vector.broadcast %214 : vector<1x8x1xf32> to vector<1x8x8xf32>
    %216 = arith.subf %212, %215 : vector<1x8x8xf32>
    %217 = math.exp %216 : vector<1x8x8xf32>
    %cst_59 = arith.constant dense<0.000000e+00> : vector<1x8xf32>
    %218 = vector.multi_reduction <add>, %217, %cst_59 [2] : vector<1x8x8xf32> to vector<1x8xf32>
    %219 = vector.shape_cast %218 : vector<1x8xf32> to vector<1x8x1xf32>
    %220 = arith.truncf %217 : vector<1x8x8xf32> to vector<1x8x8xbf16>
    "tpu.trace_start"() <{level = 10 : i32, message = "bqk,bkd->bqd"}> : () -> ()
    %cst_60 = arith.constant dense<0.000000e+00> : vector<1x8x16xf32>
    %221 = tpu.matmul %220, %208, %cst_60 {dimension_numbers = #tpu.dot_dimension_numbers<[2], [1], [1], [2], [0, 0, 0, 1, 1, 2], [0], [0]>} : vector<1x8x8xbf16>, vector<1x8x16xbf16>, vector<1x8x16xf32> -> vector<1x8x16xf32>
    "tpu.trace_stop"() : () -> ()
    %222 = tpu.reciprocal %219 {approx = true} : vector<1x8x1xf32> -> vector<1x8x1xf32>
    %223 = vector.broadcast %222 : vector<1x8x1xf32> to vector<1x8x16xf32>
    %224 = arith.mulf %221, %223 : vector<1x8x16xf32>
    %225 = vector.shape_cast %224 : vector<1x8x16xf32> to vector<8x16xf32>
    %226 = arith.truncf %225 : vector<8x16xf32> to vector<8x16xbf16>
    %227 = vector.extract_strided_slice %39 {offsets = [96, 0], sizes = [16, 128], strides = [1, 1]} : vector<128x128xbf16> to vector<16x128xbf16>
    %cst_61 = arith.constant dense<0.000000e+00> : vector<8x128xf32>
    %228 = tpu.matmul %226, %227, %cst_61 {dimension_numbers = #tpu.dot_dimension_numbers<[1], [0], [0], [1], [0, 0, 1, 1], [], []>} : vector<8x16xbf16>, vector<16x128xbf16>, vector<8x128xf32> -> vector<8x128xf32>
    %229 = arith.addf %202, %228 : vector<8x128xf32>
    %230 = vector.extract_strided_slice %32 {offsets = [0, 112], sizes = [8, 16], strides = [1, 1]} : vector<8x384xbf16> to vector<8x16xbf16>
    %231 = vector.shape_cast %230 : vector<8x16xbf16> to vector<1x8x16xbf16>
    %232 = vector.extract_strided_slice %32 {offsets = [0, 240], sizes = [8, 16], strides = [1, 1]} : vector<8x384xbf16> to vector<8x16xbf16>
    %233 = vector.shape_cast %232 : vector<8x16xbf16> to vector<1x8x16xbf16>
    %234 = vector.extract_strided_slice %32 {offsets = [0, 368], sizes = [8, 16], strides = [1, 1]} : vector<8x384xbf16> to vector<8x16xbf16>
    %235 = vector.shape_cast %234 : vector<8x16xbf16> to vector<1x8x16xbf16>
    "tpu.trace_start"() <{level = 10 : i32, message = "bqd,bkd->bqk"}> : () -> ()
    %cst_62 = arith.constant dense<0.000000e+00> : vector<1x8x8xf32>
    %236 = tpu.matmul %231, %233, %cst_62 {dimension_numbers = #tpu.dot_dimension_numbers<[2], [2], [1], [1], [0, 0, 0, 1, 1, 1], [0], [0]>} : vector<1x8x16xbf16>, vector<1x8x16xbf16>, vector<1x8x8xf32> -> vector<1x8x8xf32>
    "tpu.trace_stop"() : () -> ()
    %cst_63 = arith.constant 2.500000e-01 : f32
    %237 = vector.broadcast %cst_63 : f32 to vector<1x8x8xf32>
    %238 = arith.mulf %236, %237 : vector<1x8x8xf32>
    %239 = arith.addf %238, %38 : vector<1x8x8xf32>
    %cst_64 = arith.constant dense<0xFF800000> : vector<1x8xf32>
    %240 = vector.multi_reduction <maximumf>, %239, %cst_64 [2] : vector<1x8x8xf32> to vector<1x8xf32>
    %241 = vector.shape_cast %240 : vector<1x8xf32> to vector<1x8x1xf32>
    %242 = vector.broadcast %241 : vector<1x8x1xf32> to vector<1x8x8xf32>
    %243 = arith.subf %239, %242 : vector<1x8x8xf32>
    %244 = math.exp %243 : vector<1x8x8xf32>
    %cst_65 = arith.constant dense<0.000000e+00> : vector<1x8xf32>
    %245 = vector.multi_reduction <add>, %244, %cst_65 [2] : vector<1x8x8xf32> to vector<1x8xf32>
    %246 = vector.shape_cast %245 : vector<1x8xf32> to vector<1x8x1xf32>
    %247 = arith.truncf %244 : vector<1x8x8xf32> to vector<1x8x8xbf16>
    "tpu.trace_start"() <{level = 10 : i32, message = "bqk,bkd->bqd"}> : () -> ()
    %cst_66 = arith.constant dense<0.000000e+00> : vector<1x8x16xf32>
    %248 = tpu.matmul %247, %235, %cst_66 {dimension_numbers = #tpu.dot_dimension_numbers<[2], [1], [1], [2], [0, 0, 0, 1, 1, 2], [0], [0]>} : vector<1x8x8xbf16>, vector<1x8x16xbf16>, vector<1x8x16xf32> -> vector<1x8x16xf32>
    "tpu.trace_stop"() : () -> ()
    %249 = tpu.reciprocal %246 {approx = true} : vector<1x8x1xf32> -> vector<1x8x1xf32>
    %250 = vector.broadcast %249 : vector<1x8x1xf32> to vector<1x8x16xf32>
    %251 = arith.mulf %248, %250 : vector<1x8x16xf32>
    %252 = vector.shape_cast %251 : vector<1x8x16xf32> to vector<8x16xf32>
    %253 = arith.truncf %252 : vector<8x16xf32> to vector<8x16xbf16>
    %254 = vector.extract_strided_slice %39 {offsets = [112, 0], sizes = [16, 128], strides = [1, 1]} : vector<128x128xbf16> to vector<16x128xbf16>
    %cst_67 = arith.constant dense<0.000000e+00> : vector<8x128xf32>
    %255 = tpu.matmul %253, %254, %cst_67 {dimension_numbers = #tpu.dot_dimension_numbers<[1], [0], [0], [1], [0, 0, 1, 1], [], []>} : vector<8x16xbf16>, vector<16x128xbf16>, vector<8x128xf32> -> vector<8x128xf32>
    %256 = arith.addf %229, %255 : vector<8x128xf32>
    %257 = arith.addf %1, %256 : vector<8x128xf32>
    %c0_68 = arith.constant 0 : index
    %c0_69 = arith.constant 0 : index
    %258 = vector.load %arg7[%c0_68, %c0_69] : memref<1x128xf32, #tpu.memory_space<vmem>>, vector<1x128xf32>
    %259 = vector.broadcast %258 : vector<1x128xf32> to vector<8x128xf32>
    %260 = arith.addf %257, %259 : vector<8x128xf32>
    %c0_70 = arith.constant 0 : index
    %c0_71 = arith.constant 0 : index
    %261 = vector.load %arg8[%c0_70, %c0_71] : memref<1x128xf32, #tpu.memory_space<vmem>>, vector<1x128xf32>
    %c0_72 = arith.constant 0 : index
    %c0_73 = arith.constant 0 : index
    %262 = vector.load %arg9[%c0_72, %c0_73] : memref<1x128xf32, #tpu.memory_space<vmem>>, vector<1x128xf32>
    %cst_74 = arith.constant dense<0.000000e+00> : vector<8xf32>
    %263 = vector.multi_reduction <add>, %260, %cst_74 [1] : vector<8x128xf32> to vector<8xf32>
    %264 = vector.shape_cast %263 : vector<8xf32> to vector<8x1xf32>
    %cst_75 = arith.constant 1.280000e+02 : f32
    %265 = vector.broadcast %cst_75 : f32 to vector<8x1xf32>
    %266 = arith.divf %264, %265 : vector<8x1xf32>
    %267 = vector.broadcast %266 : vector<8x1xf32> to vector<8x128xf32>
    %268 = arith.subf %260, %267 : vector<8x128xf32>
    %269 = arith.mulf %268, %268 : vector<8x128xf32>
    %cst_76 = arith.constant dense<0.000000e+00> : vector<8xf32>
    %270 = vector.multi_reduction <add>, %269, %cst_76 [1] : vector<8x128xf32> to vector<8xf32>
    %271 = vector.shape_cast %270 : vector<8xf32> to vector<8x1xf32>
    %cst_77 = arith.constant 1.280000e+02 : f32
    %272 = vector.broadcast %cst_77 : f32 to vector<8x1xf32>
    %273 = arith.divf %271, %272 : vector<8x1xf32>
    %cst_78 = arith.constant 9.99999974E-6 : f32
    %274 = vector.broadcast %cst_78 : f32 to vector<8x1xf32>
    %275 = arith.addf %273, %274 : vector<8x1xf32>
    %276 = math.rsqrt %275 : vector<8x1xf32>
    %277 = vector.broadcast %266 : vector<8x1xf32> to vector<8x128xf32>
    %278 = arith.subf %260, %277 : vector<8x128xf32>
    %279 = vector.broadcast %276 : vector<8x1xf32> to vector<8x128xf32>
    %280 = arith.mulf %278, %279 : vector<8x128xf32>
    %281 = vector.broadcast %261 : vector<1x128xf32> to vector<8x128xf32>
    %282 = arith.mulf %280, %281 : vector<8x128xf32>
    %283 = vector.broadcast %262 : vector<1x128xf32> to vector<8x128xf32>
    %284 = arith.addf %282, %283 : vector<8x128xf32>
    %c0_79 = arith.constant 0 : index
    %c0_80 = arith.constant 0 : index
    %285 = vector.load %arg10[%c0_79, %c0_80] : memref<128x128xbf16, #tpu.memory_space<vmem>>, vector<128x128xbf16>
    %286 = arith.truncf %284 : vector<8x128xf32> to vector<8x128xbf16>
    %cst_81 = arith.constant dense<0.000000e+00> : vector<8x128xf32>
    %287 = tpu.matmul %286, %285, %cst_81 {dimension_numbers = #tpu.dot_dimension_numbers<[1], [0], [0], [1], [0, 0, 1, 1], [], []>} : vector<8x128xbf16>, vector<128x128xbf16>, vector<8x128xf32> -> vector<8x128xf32>
    %c0_82 = arith.constant 0 : index
    %c0_83 = arith.constant 0 : index
    %288 = vector.load %arg11[%c0_82, %c0_83] : memref<1x128xf32, #tpu.memory_space<vmem>>, vector<1x128xf32>
    %289 = vector.broadcast %288 : vector<1x128xf32> to vector<8x128xf32>
    %290 = arith.addf %287, %289 : vector<8x128xf32>
    %cst_84 = arith.constant 0.000000e+00 : f32
    %291 = vector.broadcast %cst_84 : f32 to vector<8x128xf32>
    %292 = arith.maximumf %290, %291 : vector<8x128xf32>
    %c0_85 = arith.constant 0 : index
    %c0_86 = arith.constant 0 : index
    %293 = vector.load %arg12[%c0_85, %c0_86] : memref<128x128xbf16, #tpu.memory_space<vmem>>, vector<128x128xbf16>
    %294 = arith.truncf %292 : vector<8x128xf32> to vector<8x128xbf16>
    %cst_87 = arith.constant dense<0.000000e+00> : vector<8x128xf32>
    %295 = tpu.matmul %294, %293, %cst_87 {dimension_numbers = #tpu.dot_dimension_numbers<[1], [0], [0], [1], [0, 0, 1, 1], [], []>} : vector<8x128xbf16>, vector<128x128xbf16>, vector<8x128xf32> -> vector<8x128xf32>
    %c0_88 = arith.constant 0 : index
    %c0_89 = arith.constant 0 : index
    %296 = vector.load %arg13[%c0_88, %c0_89] : memref<1x128xf32, #tpu.memory_space<vmem>>, vector<1x128xf32>
    %297 = vector.broadcast %296 : vector<1x128xf32> to vector<8x128xf32>
    %298 = arith.addf %295, %297 : vector<8x128xf32>
    %299 = arith.addf %260, %298 : vector<8x128xf32>
    %300 = vector.shape_cast %299 : vector<8x128xf32> to vector<1x8x128xf32>
    %c0_90 = arith.constant 0 : index
    %c0_91 = arith.constant 0 : index
    %c0_92 = arith.constant 0 : index
    %301 = vector.load %arg14[%c0_90, %c0_91, %c0_92] : memref<1x8x128xf32, #tpu.memory_space<vmem>>, vector<1x8x128xf32>
    tpu.vector_store %arg14[%c0_90, %c0_91, %c0_92], %300 {strides = array<i32>} : memref<1x8x128xf32, #tpu.memory_space<vmem>>, vector<1x8x128xf32>,
    return
  }
  func.func @transform_0(%arg0: i32) -> (i32, i32, i32) {
    %c0_i32 = arith.constant 0 : i32
    %c0_i32_0 = arith.constant 0 : i32
    %c0_i32_1 = arith.constant 0 : i32
    return %arg0, %c0_i32, %c0_i32_0 : i32, i32, i32
  }
  func.func @transform_1(%arg0: i32) -> (i32, i32) {
    %c0_i32 = arith.constant 0 : i32
    %c0_i32_0 = arith.constant 0 : i32
    %c0_i32_1 = arith.constant 0 : i32
    return %c0_i32, %c0_i32_0 : i32, i32
  }
  func.func @transform_2(%arg0: i32) -> (i32, i32) {
    %c0_i32 = arith.constant 0 : i32
    %c0_i32_0 = arith.constant 0 : i32
    %c0_i32_1 = arith.constant 0 : i32
    return %c0_i32, %c0_i32_0 : i32, i32
  }
  func.func @transform_3(%arg0: i32) -> (i32, i32) {
    %c0_i32 = arith.constant 0 : i32
    %c0_i32_0 = arith.constant 0 : i32
    %c0_i32_1 = arith.constant 0 : i32
    return %c0_i32, %c0_i32_0 : i32, i32
  }
  func.func @transform_4(%arg0: i32) -> (i32, i32) {
    %c0_i32 = arith.constant 0 : i32
    %c0_i32_0 = arith.constant 0 : i32
    %c0_i32_1 = arith.constant 0 : i32
    return %c0_i32, %c0_i32_0 : i32, i32
  }
  func.func @transform_5(%arg0: i32) -> (i32, i32) {
    %c0_i32 = arith.constant 0 : i32
    %c0_i32_0 = arith.constant 0 : i32
    %c0_i32_1 = arith.constant 0 : i32
    return %c0_i32, %c0_i32_0 : i32, i32
  }
  func.func @transform_6(%arg0: i32) -> (i32, i32) {
    %c0_i32 = arith.constant 0 : i32
    %c0_i32_0 = arith.constant 0 : i32
    %c0_i32_1 = arith.constant 0 : i32
    return %c0_i32, %c0_i32_0 : i32, i32
  }
  func.func @transform_7(%arg0: i32) -> (i32, i32) {
    %c0_i32 = arith.constant 0 : i32
    %c0_i32_0 = arith.constant 0 : i32
    %c0_i32_1 = arith.constant 0 : i32
    return %c0_i32, %c0_i32_0 : i32, i32
  }
  func.func @transform_8(%arg0: i32) -> (i32, i32) {
    %c0_i32 = arith.constant 0 : i32
    %c0_i32_0 = arith.constant 0 : i32
    %c0_i32_1 = arith.constant 0 : i32
    return %c0_i32, %c0_i32_0 : i32, i32
  }
  func.func @transform_9(%arg0: i32) -> (i32, i32) {
    %c0_i32 = arith.constant 0 : i32
    %c0_i32_0 = arith.constant 0 : i32
    %c0_i32_1 = arith.constant 0 : i32
    return %c0_i32, %c0_i32_0 : i32, i32
  }
  func.func @transform_10(%arg0: i32) -> (i32, i32) {
    %c0_i32 = arith.constant 0 : i32
    %c0_i32_0 = arith.constant 0 : i32
    %c0_i32_1 = arith.constant 0 : i32
    return %c0_i32, %c0_i32_0 : i32, i32
  }
  func.func @transform_11(%arg0: i32) -> (i32, i32) {
    %c0_i32 = arith.constant 0 : i32
    %c0_i32_0 = arith.constant 0 : i32
    %c0_i32_1 = arith.constant 0 : i32
    return %c0_i32, %c0_i32_0 : i32, i32
  }
  func.func @transform_12(%arg0: i32) -> (i32, i32) {
    %c0_i32 = arith.constant 0 : i32
    %c0_i32_0 = arith.constant 0 : i32
    %c0_i32_1 = arith.constant 0 : i32
    return %c0_i32, %c0_i32_0 : i32, i32
  }
  func.func @transform_13(%arg0: i32) -> (i32, i32, i32) {
    %c0_i32 = arith.constant 0 : i32
    %c0_i32_0 = arith.constant 0 : i32
    %c0_i32_1 = arith.constant 0 : i32
    return %arg0, %c0_i32, %c0_i32_0 : i32, i32, i32
  }
}

</mosaic_0001>

<bundles_post_ra>
// kernel: tpu_custom_call.1
= control target key start
LH: loop header
LB: loop body
LE: loop exit
PB: predicated region body
PF: predicated region fallthrough
CT: control target
= control target key end

     0   :  { %s3928_s0 = inlined_call_operand.hbm [shape: f32[2,8,128], index: 0, kind: input, shape index: {}]   ;;  %s3929_s1 = inlined_call_operand.vmem [shape: f32[1,128], index: 1, kind: input, shape index: {}]   ;;  %s3930_s2 = inlined_call_operand.vmem [shape: f32[1,128], index: 2, kind: input, shape index: {}]   ;;  %s3931_s3 = inlined_call_operand.hbm [shape: bf16[128,384], index: 3, kind: input, shape index: {}]   ;;  %s3932_s4 = inlined_call_operand.vmem [shape: f32[1,384], index: 4, kind: input, shape index: {}]   ;;  %s3933_s5 = inlined_call_operand.hbm [shape: bf16[128,128], index: 5, kind: input, shape index: {}]   ;;  %s3934_s6 = inlined_call_operand.vmem [shape: f32[1,128], index: 6, kind: input, shape index: {}]   ;;  %s3935_s7 = inlined_call_operand.vmem [shape: f32[1,128], index: 7, kind: input, shape index: {}]   ;;  %s3936_s8 = inlined_call_operand.vmem [shape: f32[1,128], index: 8, kind: input, shape index: {}]   ;;  %s3937_s9 = inlined_call_operand.hbm [shape: bf16[128,128], index: 9, kind: input, shape index: {}]   ;;  %s3938_s10 = inlined_call_operand.vmem [shape: f32[1,128], index: 10, kind: input, shape index: {}]   ;;  %s3939_s11 = inlined_call_operand.hbm [shape: bf16[128,128], index: 11, kind: input, shape index: {}]   ;;  %s3940_s12 = inlined_call_operand.vmem [shape: f32[1,128], index: 12, kind: input, shape index: {}]   ;;  %s3941_s13 = inlined_call_operand.hbm [shape: f32[2,8,128], index: 13, kind: output, shape index: {}]  }
   0x1   :  { %3946 = sst [smem:[#allocation16_spill]] %s3931_s3 }
   0x2   :  { %3947 = sst [smem:[#allocation17_spill]] %s3935_s7 }
   0x3   :  { %3948 = sst [smem:[#allocation18_spill]] %s3936_s8 }
   0x4   :  { %3949 = sst [smem:[#allocation19_spill]] %s3938_s10 }
   0x5   :  { %3950 = sst [smem:[#allocation20_spill]] %s3940_s12 }
   0x6   :  { %3951 = sst [smem:[#allocation21_spill]] %s3941_s13 }
   0x7   :  { %18 = vsyncpa [#allocation3], 0 }
   0x8   :  { %20 = vsyncpa [#allocation3 + $0x1], 0 }
   0x9   :  { %21 = vsyncpa [#allocation6], 0 }
   0xa   :  { %22 = vsyncpa [#allocation9], 0 }
   0xb   :  { %23 = vsyncpa [#allocation4], 0 }
   0xc   :  { %25 = vsyncpa [#allocation4 + $0x1], 0  ;;  %s3395_s25 = smov 0   ;;  %s3397_s26 = smov 0  }
   0xd   :  { %s3399_s27 = smov 0   ;;  %s3401_s28 = smov 0  }
   0xe LB: > { %s3305_s29 = smov [#allocation5]   ;;  %s3416_s14 = sadd.s32 4294967295, %s3303_s28   ;;  %s3303_s28 = sphi %s3401_s28, %s3978_s28   ;;  %s3299_s27 = sphi %s3399_s27, %s3977_s27   ;;  %s3295_s26 = sphi %s3397_s26, %s3976_s26   ;;  %s3291_s25 = sphi %s3395_s25, %s3975_s25  }
   0xf   : > { %s358_s30 = sshll.u32 %s3305_s29, 4  ;;  %p2516_p0 = scmp.ge.s32.totalorder %s3303_s28, 1  ;;  %s3421_s30 = int_to_ptr.vmem [resolvable:$true] %s358_s30 }
  0x10   : > { %p3943_p1 = scmp.eq.s32.totalorder %s3416_s14, 0  ;;  %p340_p2 = scmp.lt.s32.totalorder %s3303_s28, 3 }
  0x11   : > { %s3306_s17 = smov [#allocation8]   ;;  %s3307_s19 = smov [#allocation7]  }
  0x12   : > { %p3423_p3 = pnand %p2516_p0, %p340_p2  ;;  %s396_s18 = sshll.u32 %s3306_s17, 4  ;;  %s3436_s18 = int_to_ptr.vmem [resolvable:$true] %s396_s18 }
  0x13   : > { %s3438_s20 = sshll.u32 %s3307_s19, 4  ;;  %s3954_s3 = sld [smem:[#allocation16_spill]]  ;;  %s375_s20 = int_to_ptr.vmem [resolvable:$true] %s3438_s20 }
  0x14   : > { %s3952_s15 = scalar_select %p3423_p3, 1, 0 }
  0x15   : > { %p2913_p5 = pneg %p3423_p3 }
  0x17   : > { %p3432_p6 = pnand %p2913_p5, %p3943_p1 }
  0x19   : > { %s3087_s23 = scalar_lea.hbm %s3954_s3, 3072  ;;  %p3448_p8 = pneg %p3432_p6 }
  0x1a   : > { %p3088_p7 = scmp.ne.s32.totalorder %s3954_s3, %s3087_s23  ;;  %p3094_p11 = scmp.lt.u32.totalorder %s3087_s23, %s3954_s3 }
  0x1c   : > { %p3090_p9 = pnand %p3448_p8, %p3088_p7 }
  0x1e   : > { %p3091_p10 = pneg %p3090_p9 }
  0x20   : > { %p3096_p12 = pnand %p3094_p11, %p3091_p10 }
  0x22   : > { %3099 = shalt.err (!%p3096_p12)
}
  0x23   : > { %s3100_s21 = scalar_lea.vmem %s3421_s30, 3072  ;;  %p3108_p5 = scmp.lt.s32.totalorder %s3421_s30, %s3421_s30 }
  0x24   : > { %p3101_p13 = scmp.ne.s32.totalorder %s3421_s30, %s3100_s21  ;;  %p3109_p4 = scmp.lt.s32.totalorder %s3100_s21, %s3100_s21 }
  0x26   : > { %p3103_p0 = pnand %p3101_p13, %p3448_p8  ;;  %p3110_p7 = por %p3109_p4, %p3108_p5 }
  0x28   : > { %p3104_p2 = pneg %p3103_p0 }
  0x2a   : > { %p3111_p9 = pnand %p3110_p7, %p3104_p2 }
  0x2c   : > { %3114 = shalt.err (!%p3111_p9)
}
  0x2d   : > { %s3308_s22 = smov 192   ;;  %s3309_s23 = smov 12  }
  0x2e   : > { %2916 = dma.hbm_to_vmem [thread:$0]  (!%p3432_p6), %s3954_s3, 3072, %s3421_s30, [#allocation6], %s3308_s22, %s3308_s22, %s3309_s23  }
  0x2f   : > { %s3115_s12 = scalar_lea.hbm %s3937_s9, 1024 }
  0x30   : > { %p3116_p4 = scmp.ne.s32.totalorder %s3937_s9, %s3115_s12  ;;  %p3122_p12 = scmp.lt.u32.totalorder %s3115_s12, %s3937_s9 }
  0x32   : > { %p3118_p10 = pnand %p3116_p4, %p3448_p8 }
  0x34   : > { %p3119_p11 = pneg %p3118_p10 }
  0x36   : > { %p3124_p13 = pnand %p3122_p12, %p3119_p11 }
  0x38   : > { %3127 = shalt.err (!%p3124_p13)
}
  0x39   : > { %s3128_s30 = scalar_lea.vmem %s3436_s18, 1024  ;;  %p3136_p7 = scmp.lt.s32.totalorder %s3436_s18, %s3436_s18 }
  0x3a   : > { %p3129_p0 = scmp.ne.s32.totalorder %s3436_s18, %s3128_s30  ;;  %p3137_p9 = scmp.lt.s32.totalorder %s3128_s30, %s3128_s30 }
  0x3c   : > { %p3131_p2 = pnand %p3129_p0, %p3448_p8  ;;  %p3138_p4 = por %p3137_p9, %p3136_p7 }
  0x3e   : > { %p3132_p5 = pneg %p3131_p2 }
  0x40   : > { %p3139_p10 = pnand %p3138_p4, %p3132_p5 }
  0x42   : > { %3142 = shalt.err (!%p3139_p10)
}
  0x43   : > { %s3310_s8 = smov 64   ;;  %s3311_s7 = smov 4  }
  0x44   : > { %2922 = dma.hbm_to_vmem [thread:$0]  (!%p3432_p6), %s3937_s9, 1024, %s3436_s18, [#allocation9], %s3310_s8, %s3310_s8, %s3311_s7  }
  0x45   : > { %s3143_s24 = scalar_lea.hbm %s3933_s5, 1024 }
  0x46   : > { %p3144_p11 = scmp.ne.s32.totalorder %s3933_s5, %s3143_s24  ;;  %p3150_p0 = scmp.lt.u32.totalorder %s3143_s24, %s3933_s5 }
  0x48   : > { %p3146_p12 = pnand %p3144_p11, %p3448_p8 }
  0x4a   : > { %p3147_p13 = pneg %p3146_p12 }
  0x4c   : > { %p3152_p2 = pnand %p3150_p0, %p3147_p13 }
  0x4e   : > { %3155 = shalt.err (!%p3152_p2)
}
  0x4f   : > { %s3156_s30 = scalar_lea.vmem %s375_s20, 1024  ;;  %p3164_p4 = scmp.lt.s32.totalorder %s375_s20, %s375_s20 }
  0x50   : > { %p3157_p5 = scmp.ne.s32.totalorder %s375_s20, %s3156_s30  ;;  %p3165_p10 = scmp.lt.s32.totalorder %s3156_s30, %s3156_s30 }
  0x52   : > { %p3159_p7 = pnand %p3157_p5, %p3448_p8  ;;  %p3166_p1 = por %p3165_p10, %p3164_p4 }
  0x54   : > { %p3160_p9 = pneg %p3159_p7 }
  0x56   : > { %p3167_p3 = pnand %p3166_p1, %p3160_p9 }
  0x58   : > { %3170 = shalt.err (!%p3167_p3)
}
  0x59   : > { %2919 = dma.hbm_to_vmem [thread:$0]  (!%p3432_p6), %s3933_s5, 1024, %s375_s20, [#allocation6], %s3310_s8, %s3310_s8, %s3311_s7  }
  0x5a   : > { %s3312_s12 = smov [#allocation10]   ;;  %s3171_s29 = scalar_lea.hbm %s3939_s11, 1024 }
  0x5b   : > { %s412_s22 = sshll.u32 %s3312_s12, 4  ;;  %p3172_p1 = scmp.ne.s32.totalorder %s3939_s11, %s3171_s29  ;;  %s413_s22 = int_to_ptr.vmem [resolvable:$true] %s412_s22 }
  0x5c   : > { %p3178_p12 = scmp.lt.u32.totalorder %s3171_s29, %s3939_s11 }
  0x5d   : > { %p3174_p3 = pnand %p3172_p1, %p3448_p8 }
  0x5f   : > { %p3175_p11 = pneg %p3174_p3 }
  0x61   : > { %p3180_p13 = pnand %p3178_p12, %p3175_p11 }
  0x63   : > { %3183 = shalt.err (!%p3180_p13)
}
  0x64   : > { %s3184_s20 = scalar_lea.vmem %s413_s22, 1024  ;;  %p3192_p7 = scmp.lt.s32.totalorder %s413_s22, %s413_s22 }
  0x65   : > { %p3185_p0 = scmp.ne.s32.totalorder %s413_s22, %s3184_s20  ;;  %p3193_p9 = scmp.lt.s32.totalorder %s3184_s20, %s3184_s20 }
  0x67   : > { %p3187_p2 = pnand %p3185_p0, %p3448_p8  ;;  %p3194_p4 = por %p3193_p9, %p3192_p7 }
  0x69   : > { %p3188_p5 = pneg %p3187_p2 }
  0x6b   : > { %p3195_p10 = pnand %p3194_p4, %p3188_p5 }
  0x6d   : > { %3198 = shalt.err (!%p3195_p10)
}
  0x6e   : > { %2925 = dma.hbm_to_vmem [thread:$0]  (!%p3432_p6), %s3939_s11, 1024, %s413_s22, [#allocation9], %s3310_s8, %s3310_s8, %s3311_s7  }
  0x6f   : > { %s2515_s13 = sadd.s32 4294967294, %s3303_s28   ;;  %s3540_s16 = sadd.s32 1, %s3303_s28  }
  0x70   : > { %s35_s12 = ssub.s32 %s3303_s28, %s3540_s16  ;;  %s38_s23 = sadd.s32 1, %s3299_s27 }
  0x71   : > { %p36_p8 = scmp.eq.s32.totalorder %s35_s12, 0  ;;  %p45_p1 = scmp.ne.s32.totalorder %s3299_s27, %s3295_s26 }
  0x72   : > { %p46_p3 = scmp.eq.s32.totalorder %s3303_s28, 0  ;;  %p51_p11 = scmp.ne.s32.totalorder %s3295_s26, %s3291_s25 }
  0x73   : > { %s3551_s24 = scalar_select %p36_p8, %s3299_s27, %s38_s23  }
  0x74   : > { %p3553_p12 = por %p46_p3, %p45_p1  ;;  %p3957_p13 = scmp.eq.s32.totalorder %s3416_s14, 0 }
  0x75   : > { %p327_p0 = scmp.eq.s32.totalorder %s3416_s14, 1  ;;  %p333_p2 = scmp.eq.s32.totalorder %s2515_s13, 1 }
  0x76   : > { %p3559_p6 = por %p3957_p13, %p51_p11  ;;  %p2938_p5 = scmp.lt.s32.totalorder %s3303_s28, 2 }
  0x77   : > { %s429_s7 = sand.u32 1, %s3299_s27   ;;  %p3566_p7 = por %p327_p0, %p45_p1 }
  0x78   : > { %p3570_p9 = por %p333_p2, %p51_p11  ;;  %s2522_s19 = sshll.u32 %s429_s7, 3 }
  0x79   : > { %s3959_s22 = scalar_select %p3566_p7, 1, 0 }
  0x7a   : > { %s3960_s17 = scalar_select %p3570_p9, 1, 0 }
  0x7b   : > { %s2523_s21 = sshll.u32 %s3303_s28, 7  ;;  %s433_s10 = scalar_lea.vmem [#allocation2], %s2522_s19 }
  0x7c   : > { %s3578_s18 = scalar_lea.hbm %s3928_s0, %s2523_s21  ;;  %s440_s13 = sshll.u32 %s433_s10, 4  ;;  %s3580_s13 = int_to_ptr.vmem [resolvable:$true] %s440_s13 }
  0x7d   : > { %p3584_p4 = pnand %p2938_p5, %p3553_p12  ;;  %s430_s23 = scalar_lea.sflag [#allocation3], %s429_s7 }
  0x7e   : > { %s3199_s3 = scalar_lea.hbm %s3578_s18, 128  ;;  %s3204_s30 = scalar_lea.hbm %s3928_s0, 256 }
  0x7f   : > { %p3200_p10 = scmp.ne.s32.totalorder %s3578_s18, %s3199_s3  ;;  %p3201_p8 = pneg %p3584_p4 }
  0x80   : > { %p3205_p11 = scmp.lt.u32.totalorder %s3578_s18, %s3928_s0  ;;  %p3206_p12 = scmp.lt.u32.totalorder %s3204_s30, %s3199_s3 }
  0x81   : > { %p3202_p1 = pnand %p3201_p8, %p3200_p10  ;;  %p3208_p0 = scmp.lt.u32.totalorder %s3199_s3, %s3578_s18 }
  0x82   : > { %p3207_p13 = por %p3206_p12, %p3205_p11 }
  0x83   : > { %p3203_p3 = pneg %p3202_p1 }
  0x84   : > { %p3209_p2 = por %p3208_p0, %p3207_p13 }
  0x86   : > { %p3210_p5 = pnand %p3209_p2, %p3203_p3 }
  0x88   : > { %3213 = shalt.err (!%p3210_p5)
}
  0x89   : > { %s3214_s7 = scalar_lea.vmem %s3580_s13, 128  ;;  %s3313_s10 = smov [#allocation2]  }
  0x8a   : > { %p3215_p10 = scmp.ne.s32.totalorder %s3580_s13, %s3214_s7  ;;  %s3219_s19 = sshll.u32 %s3313_s10, 4  ;;  %s3220_s19 = int_to_ptr.vmem [resolvable:$false] %s3219_s19 }
  0x8b   : > { %s3221_s21 = scalar_lea.vmem %s3220_s19, 256  ;;  %p3222_p7 = scmp.lt.s32.totalorder %s3580_s13, %s3220_s19 }
  0x8c   : > { %p3217_p1 = pnand %p3215_p10, %p3201_p8  ;;  %p3223_p11 = scmp.lt.s32.totalorder %s3221_s21, %s3214_s7 }
  0x8e   : > { %p3218_p9 = pneg %p3217_p1  ;;  %p3224_p12 = por %p3223_p11, %p3222_p7 }
  0x90   : > { %p3225_p13 = pnand %p3224_p12, %p3218_p9 }
  0x92   : > { %3228 = shalt.err (!%p3225_p13)
}
  0x93   : > { %2929 = dma.hbm_to_vmem [thread:$0]  (!%p3584_p4), %s3578_s18, 128, %s3580_s13, %s430_s23  }
  0x94   : > { %p3962_p3 = scmp.ne.s32.totalorder %s3952_s15, 0 }
  0x95   : > { %s3616_s3 = sand.u32 (!%p3962_p3), 1, %s3295_s26  }
  0x96   : > { %449 = sbr.rel (%p3962_p3) target bundleno = 4909 (0x132d), region = 72  ;;  %s2525_s30 = sshll.u32 (!%p3962_p3), %s3616_s3, 3 }
  0x97   : > { %s452_s29 = scalar_lea.sflag (!%p3962_p3), [#allocation3], %s3616_s3  ;;  %s3622_s20 = scalar_lea.vmem (!%p3962_p3), [#allocation2], %s2525_s30 }
  0x9d   : > { %3274 = dma.done.wait (%p3559_p6), %s452_s29, 128  }
  0x9e   : > { %3276 = vsyncadd (%p3559_p6), %s452_s29, 4294967168  ;;  %p3963_p7 = scmp.eq.s32.totalorder %s3416_s14, 0 }
  0xa0   : > { %3278 = dma.done.wait (%p3963_p7), [#allocation6], 4096   ;;  %p3964_p9 = pmov %p3963_p7 }
  0xa1   : > { %p3965_p4 = pmov %p3963_p7 }
  0xa2   : > { %3280 = vsyncadd (%p3964_p9), [#allocation6], 4294963200 }
  0xa3   : > { %3282 = dma.done.wait (%p3965_p4), [#allocation9], 2048   ;;  %p3966_p8 = pmov %p3965_p4 }
  0xa4   : > { %v515_v0 = vld [vmem:[%s3622_s20] sm:$0xff]  ;;  %v2996_v2 = vld [vmem:[#allocation5] ss:$12 sps:$4 sm:$0xff]   ;;  %v3314_v3 = vmov 0.0   ;;  %v3315_v25 = vmov 0   ;;  %vm3316_vm0 = vmmov 0   ;;  %v579_v41 = vlaneseq }
  0xa5   : > { %3284 = vsyncadd (%p3966_p8), [#allocation9], 4294965248  ;;  %518 = vadd.xlane.f32.xlu0 %v515_v0  ;;  %v2994_v1 = vld [vmem:[#allocation5 + $0x4] ss:$12 sps:$4 sm:$0xff]   ;;  %2689 = vmatprep.subr.bf16.mxu1 %v3314_v3  ;;  %v2997_v4 = vld [vmem:[#allocation5 + $0x8] ss:$12 sps:$4 sm:$0xff]  }
  0xa6   : > { %v2998_v5 = vld [vmem:[#allocation5 + $0x1c] ss:$12 sps:$4 sm:$0xff]   ;;  %v3000_v6 = vld [vmem:[#allocation5 + $0x18] ss:$12 sps:$4 sm:$0xff]   ;;  %722 = vmatprep.subr.bf16.mxu0 %v2994_v1  ;;  %v3001_v7 = vld [vmem:[#allocation5 + $0x20] ss:$12 sps:$4 sm:$0xff]   ;;  %2690 = vmatpush3.bf16.msra.mxu1 %v2997_v4 }
  0xa7   : > { %v3002_v8 = vld [vmem:[#allocation5 + $0x34] ss:$12 sps:$4 sm:$0xff]   ;;  %723 = vmatpush1.bf16.msra.mxu0 %v2996_v2  ;;  %2691 = vmatprep.subr.bf16.mxu1 %v3314_v3  ;;  %v3004_v13 = vld [vmem:[#allocation5 + $0x30] ss:$12 sps:$4 sm:$0xff]   ;;  %v3005_v14 = vld [vmem:[#allocation5 + $0x38] ss:$12 sps:$4 sm:$0xff]  }
  0xa8   : > { %724 = vmatprep.subr.bf16.mxu0 %v2998_v5  ;;  %v3006_v15 = vld [vmem:[#allocation5 + $0x4c] ss:$12 sps:$4 sm:$0xff]   ;;  %v3008_v16 = vld [vmem:[#allocation5 + $0x48] ss:$12 sps:$4 sm:$0xff]   ;;  %v3009_v17 = vld [vmem:[#allocation5 + $0x50] ss:$12 sps:$4 sm:$0xff]   ;;  %754 = vmatprep.mubr.bf16.mxu0 %v3315_v25 }
  0xa9   : > { %v3010_v18 = vld [vmem:[#allocation5 + $0x64] ss:$12 sps:$4 sm:$0xff]   ;;  %v3012_v19 = vld [vmem:[#allocation5 + $0x60] ss:$12 sps:$4 sm:$0xff]   ;;  %v3013_v20 = vld [vmem:[#allocation5 + $0x68] ss:$12 sps:$4 sm:$0xff]   ;;  %2705 = vmatprep.mubr.msk.bf16.mxu1 %vm3316_vm0, %v3314_v3 }
  0xaa   : > { %2692 = vmatpush3.bf16.msra.mxu1 %v3001_v7  ;;  %v3014_v21 = vld [vmem:[#allocation5 + $0x7c] ss:$12 sps:$4 sm:$0xff]   ;;  %v3016_v22 = vld [vmem:[#allocation5 + $0x78] ss:$12 sps:$4 sm:$0xff]   ;;  %v3017_v23 = vld [vmem:[#allocation5 + $0x80] ss:$12 sps:$4 sm:$0xff]  }
  0xab   : > { %725 = vmatpush1.bf16.msra.mxu0 %v3000_v6  ;;  %2693 = vmatprep.subr.bf16.mxu1 %v3314_v3  ;;  %v3018_v24 = vld [vmem:[#allocation5 + $0x94] ss:$12 sps:$4 sm:$0xff]   ;;  %v3020_v26 = vld [vmem:[#allocation5 + $0x90] ss:$12 sps:$4 sm:$0xff]   ;;  %v3021_v27 = vld [vmem:[#allocation5 + $0x98] ss:$12 sps:$4 sm:$0xff]  }
  0xac   : > { %726 = vmatprep.subr.bf16.mxu0 %v3002_v8  ;;  %v3022_v28 = vld [vmem:[#allocation5 + $0xac] ss:$12 sps:$4 sm:$0xff]   ;;  %v3024_v29 = vld [vmem:[#allocation5 + $0xa8] ss:$12 sps:$4 sm:$0xff]   ;;  %v3025_v30 = vld [vmem:[#allocation5 + $0xb0] ss:$12 sps:$4 sm:$0xff]  }
  0xad   : > { %v2531_v35 = vld [vmem:[%s3929_s1] ss:$0 sm:$0xff]  ;;  %v580_v42 = vshrl.u32 %v579_v41, 7  ;;  %vm891_vm1 = vcmask 1043456   ;;  %vm828_vm2 = vcmask 130048   ;;  %s3317_s7 = smov 112  }
  0xae   : > { %2694 = vmatpush3.bf16.msra.mxu1 %v3005_v14  ;;  %v2532_v37 = vld [vmem:[%s3930_s2] ss:$0 sm:$0xff]  ;;  %v809_v6 = vand.u32 127, %v579_v41  ;;  %vm877_vm4 = vcmask 64512   ;;  %s3318_s10 = smov 96   ;;  %s3319_s19 = smov 80  }
  0xaf   : > { %727 = vmatpush1.bf16.msra.mxu0 %v3004_v13  ;;  %2695 = vmatprep.subr.bf16.mxu1 %v3314_v3  ;;  %v589_v43 = vsub.s32 2, %v580_v42  ;;  %v577_v44 = vld [vmem:[%s3932_s4] sm:$0x7]  ;;  %v585_v45 = vsub.s32 1, %v580_v42  ;;  %v581_v46 = vsub.s32 0, %v580_v42  ;;  %s3320_s21 = smov 64  }
  0xb0   : > { %728 = vmatprep.subr.bf16.mxu0 %v3006_v15  ;;  %vm810_vm3 = vcmp.gt.s32.totalorder %v809_v6, %v580_v42  ;;  %s3321_s29 = smov 48   ;;  %s3322_s15 = smov 32  }
  0xb1   : > { %v590_v47 = vrot.slane %v577_v44, %v589_v43  ;;  %v586_v48 = vrot.slane %v577_v44, %v585_v45  ;;  %v582_v49 = vrot.slane %v577_v44, %v581_v46  ;;  %v3686_v8 = vsel %vm810_vm3, -1e+30, %v3314_v3  ;;  %s3323_s8 = smov 16   ;;  %s3967_s23 = sld [smem:[#allocation17_spill]] }
  0xb2   : > { %2696 = vmatpush3.bf16.msra.mxu1 %v3009_v17  ;;  %s3970_s13 = sld [smem:[#allocation20_spill]]  ;;  %s513_s12 = scalar_lea.vmem [#allocation11], %s2525_s30 }
  0xb3   : > { %729 = vmatpush1.bf16.msra.mxu0 %v3008_v16  ;;  %2697 = vmatprep.subr.bf16.mxu1 %v3314_v3  ;;  %p3972_p0 = scmp.ne.s32.totalorder %s3959_s22, 0 }
  0xb4   : > { %730 = vmatprep.subr.bf16.mxu0 %v3010_v18 }
  0xb6   : > { %2698 = vmatpush3.bf16.msra.mxu1 %v3013_v20 }
  0xb7   : > { %731 = vmatpush1.bf16.msra.mxu0 %v3012_v19  ;;  %2699 = vmatprep.subr.bf16.mxu1 %v3314_v3 }
  0xb8   : > { %732 = vmatprep.subr.bf16.mxu0 %v3014_v21 }
  0xba   : > { %2700 = vmatpush3.bf16.msra.mxu1 %v3017_v23 }
  0xbb   : > { %733 = vmatpush1.bf16.msra.mxu0 %v3016_v22  ;;  %2701 = vmatprep.subr.bf16.mxu1 %v3314_v3 }
  0xbc   : > { %734 = vmatprep.subr.bf16.mxu0 %v3018_v24 }
  0xbe   : > { %2702 = vmatpush3.bf16.msra.mxu1 %v3021_v27 }
  0xbf   : > { %735 = vmatpush1.bf16.msra.mxu0 %v3020_v26  ;;  %2703 = vmatprep.subr.bf16.mxu1 %v3314_v3 }
  0xc0   : > { %736 = vmatprep.subr.bf16.mxu0 %v3022_v28 }
  0xc2   : > { %2704 = vmatpush3.bf16.msra.mxu1 %v3025_v30 }
  0xc3   : > { %737 = vmatpush1.bf16.msra.mxu0 %v3024_v29  ;;  %2715 = vmatprep.subr.bf16.mxu1 %v3314_v3 }
  0xc4   : > { %2709 = vmatprep.subr.bf16.mxu0 %v3314_v3 }
 0x132   : > { %v519_v9 = vpop.xlane.xlu0 %518 }
 0x133   : > { %v521_v10 = vmul.f32 0.0078125, %v519_v9 }
 0x135   : > { %v522_v11 = vsub.f32 %v515_v0, %v521_v10 }
 0x137   : > { %v523_v12 = vmul.f32 %v522_v11, %v522_v11 }
 0x139   : > { %524 = vadd.xlane.f32.xlu0 %v523_v12 }
 0x1c6   : > { %v525_v31 = vpop.xlane.xlu0 %524 }
 0x1c7   : > { %v526_v32 = vmul.f32 0.0078125, %v525_v31 }
 0x1c9   : > { %v527_v33 = vadd.f32 1e-05, %v526_v32 }
 0x1cb   : > { %3050 = vrsqrt.f32 %v527_v33 }
 0x1d5   : > { %v3051_v34 = vpop.eup %3050 }
 0x1d6   : > { %v529_v36 = vmul.f32 %v3051_v34, %v522_v11 }
 0x1d8   : > { %v536_v38 = vmul.f32 %v2531_v35, %v529_v36  ;;  %v3026_v36 = vld [vmem:[#allocation7] sm:$0xff]  }
 0x1da   : > { %v543_v39 = vadd.f32 %v2532_v37, %v536_v38  ;;  %v3027_v37 = vld [vmem:[#allocation7 + $0x8] sm:$0xff]  }
 0x1dc   : > { %v576_v40 = vpack.c.bf16 %v543_v39, %v543_v39 }
 0x1de   : > { %755 = vmatmul.mubr.bf16.vlgmr.msra.gmra.mrb[0].mxu0 %v576_v40  ;;  %2706 = vmatmul.mubr.bf16.vlgmr.msra.gmra.mrb[0].mxu1 %v576_v40 }
 0x1df   : > { %2711 = vmatprep.mubr.msk.bf16.mxu0 %vm3316_vm0, %v3314_v3  ;;  %2717 = vmatprep.mubr.msk.bf16.mxu1 %vm3316_vm0, %v3314_v3 }
 0x2b1   : > { %v756_v50 = vpop.f32.mrb[0].mxu0  ;;  %v797_v51 = vpop.f32.mrb[0].mxu1 }
 0x2b2   : > { %v798_v52 = vadd.f32 %v797_v51, %v590_v47  ;;  %v758_v53 = vpop.f32.mrb[1].mxu0  ;;  %v2707_v54 = vpop.f32.mrb[1].mxu1  ;;  %v757_v61 = vadd.f32 %v756_v50, %v582_v49 }
 0x2b3   : > { %v759_v55 = vadd.f32 %v758_v53, %v586_v48  ;;  %v760_v56 = vpop.f32.mrb[2].mxu0  ;;  %v800_v57 = vpop.f32.mrb[2].mxu1 }
 0x2b4   : > { %v3662_v58 = vpack.c.bf16 %v798_v52, %v798_v52  ;;  %v761_v59 = vpop.f32.mrb[3].mxu0  ;;  %v2708_v60 = vpop.f32.mrb[3].mxu1  ;;  %v3672_v1 = vpack.c.bf16 %v757_v61, %v757_v61 }
 0x2b5   : > { %v3664_v62 = vpack.c.bf16 %v759_v55, %v759_v55 }
 0x2b6   : > { %v893_v63 = vsel %vm891_vm1, %v3662_v58, 0 }
 0x2b7   : > { %2716 = vmatpush3.bf16.msra.mxu1 %v893_v63  ;;  %942 = vrot.lane.b32.xlu1 %v3664_v62, %s3317_s7  ;;  %v833_v0 = vsel %vm828_vm2, %v3664_v62, 0 }
 0x2b8   : > { %2710 = vmatpush3.bf16.xpose.msra.mxu0 %v833_v0  ;;  %2727 = vmatprep.subr.bf16.mxu1 %v3314_v3 }
 0x2b9   : > { %2721 = vmatprep.subr.bf16.mxu0 %v3314_v3 }
 0x2bb   : > { %939 = vrot.lane.b32.xlu1 %v3672_v1, %s3317_s7 }
 0x2bf   : > { %2712 = vmatmul.mubr.msk.bf16.vlgmr.msra.gmra.mrb[4].mxu0 %vm828_vm2, %v3672_v1 }
 0x2c0   : > { %2723 = vmatprep.mubr.msk.bf16.mxu0 %vm3316_vm0, %v3314_v3 }
 0x329   : > { %v943_v2 = vpop.permute.xlu1 %942 }
 0x32a   : > { %v948_v4 = vsel %vm828_vm2, %v943_v2, 0 }
 0x32b   : > { %2722 = vmatpush3.bf16.xpose.msra.mxu0 %v948_v4 }
 0x32c   : > { %2733 = vmatprep.subr.bf16.mxu0 %v3314_v3 }
 0x32d   : > { %v940_v5 = vpop.permute.xlu1 %939 }
 0x332   : > { %2724 = vmatmul.mubr.msk.bf16.vlgmr.msra.gmra.mrb[8].mxu0 %vm828_vm2, %v940_v5 }
 0x333   : > { %2735 = vmatprep.mubr.msk.bf16.mxu0 %vm3316_vm0, %v3314_v3  ;;  %2734 = vmatpush3.bf16.msra.mxu0 %v3027_v37 }
 0x334   : > { %2745 = vmatprep.subr.bf16.mxu0 %v3314_v3 }
 0x392   : > { %v869_v7 = vpop.f32.mrb[4].mxu0 }
 0x393   : > { %v875_v9 = vmul.f32 0.25, %v869_v7  ;;  %v2713_v10 = vpop.f32.mrb[5].mxu0 }
 0x394   : > { %v872_v11 = vpop.f32.mrb[6].mxu0 }
 0x395   : > { %v2714_v12 = vpop.f32.mrb[7].mxu0  ;;  %v876_v13 = vadd.f32 %v875_v9, %v3686_v8 }
 0x397   : > { %v878_v14 = vsel %vm877_vm4, %v876_v13, -inf }
 0x398   : > { %879 = vmax.xlane.f32.xlu0 %v878_v14 }
 0x3ae   : > { %1003 = vrot.lane.b32.xlu0 %v3662_v58, %s3317_s7 }
 0x405   : > { %v984_v15 = vpop.f32.mrb[8].mxu0 }
 0x406   : > { %v990_v16 = vmul.f32 0.25, %v984_v15  ;;  %v2725_v17 = vpop.f32.mrb[9].mxu0 }
 0x407   : > { %v987_v18 = vpop.f32.mrb[10].mxu0 }
 0x408   : > { %v2726_v19 = vpop.f32.mrb[11].mxu0  ;;  %v991_v20 = vadd.f32 %v990_v16, %v3686_v8 }
 0x40a   : > { %v992_v21 = vsel %vm877_vm4, %v991_v20, -inf }
 0x40b   : > { %993 = vmax.xlane.f32.xlu1 %v992_v21 }
 0x41c   : > { %1154 = vrot.lane.b32.xlu1 %v3664_v62, %s3318_s10 }
 0x420   : > { %1152 = vrot.lane.b32.xlu1 %v3672_v1, %s3318_s10 }
 0x425   : > { %v880_v22 = vpop.xlane.xlu0 %879 }
 0x426   : > { %v881_v23 = vsub.f32 %v876_v13, %v880_v22 }
 0x428   : > { %v882_v24 = vmul.f32 1.442695, %v881_v23 }
 0x429   : > { %v1004_v26 = vpop.permute.xlu0 %1003 }
 0x42a   : > { %3052 = vpow2.f32 %v882_v24  ;;  %v1009_v28 = vsel %vm891_vm1, %v1004_v26, 0 }
 0x434   : > { %v3053_v25 = vpop.eup %3052 }
 0x435   : > { %v887_v27 = vpack.c.bf16 %v3053_v25, %v3053_v25  ;;  %v884_v35 = vsel %vm877_vm4, %v3053_v25, 0.0  ;;  %v3028_v25 = vld [vmem:[#allocation7 + $0x10] sm:$0xff]  }
 0x437   : > { %2718 = vmatmul.mubr.msk.bf16.vlgmr.msra.gmra.mrb[4].mxu1 %vm877_vm4, %v887_v27 }
 0x438   : > { %2728 = vmatpush3.bf16.msra.mxu1 %v1009_v28  ;;  %2729 = vmatprep.mubr.msk.bf16.mxu1 %vm3316_vm0, %v3314_v3 }
 0x439   : > { %2739 = vmatprep.subr.bf16.mxu1 %v3314_v3 }
 0x498   : > { %v994_v29 = vpop.xlane.xlu1 %993 }
 0x499   : > { %v995_v30 = vsub.f32 %v991_v20, %v994_v29 }
 0x49b   : > { %v996_v31 = vmul.f32 1.442695, %v995_v30 }
 0x49c   : > { %v1155_v53 = vpop.permute.xlu1 %1154 }
 0x49d   : > { %3054 = vpow2.f32 %v996_v31  ;;  %v1160_v57 = vsel %vm828_vm2, %v1155_v53, 0 }
 0x4a0   : > { %v1153_v59 = vpop.permute.xlu1 %1152 }
 0x4a7   : > { %v3055_v32 = vpop.eup %3054 }
 0x4a8   : > { %v998_v33 = vsel %vm877_vm4, %v3055_v32, 0.0  ;;  %v1001_v34 = vpack.c.bf16 %v3055_v32, %v3055_v32 }
 0x4a9   : > { %999 = vadd.xlane.f32.xlu0 %v998_v33 }
 0x4aa   : > { %2730 = vmatmul.mubr.msk.bf16.vlgmr.msra.gmra.mrb[8].mxu1 %vm877_vm4, %v1001_v34 }
 0x4ab   : > { %2741 = vmatprep.mubr.msk.bf16.mxu1 %vm3316_vm0, %v3314_v3  ;;  %2740 = vmatpush3.bf16.msra.mxu1 %v3026_v36 }
 0x4ac   : > { %2751 = vmatprep.subr.bf16.mxu1 %v3314_v3 }
 0x4ad   : > { %885 = vadd.xlane.f32.xlu0 %v884_v35 }
 0x4c3   : > { %1214 = vrot.lane.b32.xlu0 %v3662_v58, %s3318_s10 }
 0x4c7   : > { %1317 = vrot.lane.b32.xlu0 %v3664_v62, %s3319_s19 }
 0x4cb   : > { %1315 = vrot.lane.b32.xlu0 %v3672_v1, %s3319_s19 }
 0x50a   : > { %v929_v38 = vpop.f32.mrb[4].mxu1 }
 0x50b   : > { %v2719_v39 = vpop.f32.mrb[5].mxu1 }
 0x50c   : > { %v932_v40 = vpop.f32.mrb[6].mxu1 }
 0x50d   : > { %v2720_v41 = vpop.f32.mrb[7].mxu1 }
 0x536   : > { %v1000_v42 = vpop.xlane.xlu0 %999 }
 0x53a   : > { %v886_v43 = vpop.xlane.xlu0 %885 }
 0x53b   : > { %3056 = vrcp.f32 %v886_v43 }
 0x53c   : > { %3058 = vrcp.f32 %v1000_v42 }
 0x53e   : > { %v1215_v46 = vpop.permute.xlu0 %1214 }
 0x53f   : > { %v1220_v48 = vsel %vm891_vm1, %v1215_v46, 0 }
 0x542   : > { %v1318_v20 = vpop.permute.xlu0 %1317 }
 0x543   : > { %v1323_v23 = vsel %vm828_vm2, %v1318_v20, 0 }
 0x545   : > { %v3057_v44 = vpop.eup %3056 }
 0x546   : > { %v936_v45 = vmul.f32 %v3057_v44, %v929_v38  ;;  %v3059_v49 = vpop.eup %3058  ;;  %v1316_v24 = vpop.permute.xlu0 %1315 }
 0x548   : > { %v937_v47 = vpack.c.bf16 %v936_v45, %v936_v45 }
 0x54a   : > { %2742 = vmatmul.mubr.msk.bf16.vlgmr.msra.gmra.mrb[12].mxu1 %vm828_vm2, %v937_v47 }
 0x54b   : > { %2752 = vmatpush3.bf16.msra.mxu1 %v1220_v48  ;;  %2753 = vmatprep.mubr.msk.bf16.mxu1 %vm3316_vm0, %v3314_v3 }
 0x54c   : > { %2763 = vmatprep.subr.bf16.mxu1 %v3314_v3 }
 0x57d   : > { %v1045_v50 = vpop.f32.mrb[8].mxu1 }
 0x57e   : > { %v1052_v51 = vmul.f32 %v3059_v49, %v1045_v50  ;;  %v2731_v52 = vpop.f32.mrb[9].mxu1 }
 0x57f   : > { %v1048_v54 = vpop.f32.mrb[10].mxu1 }
 0x580   : > { %v1053_v55 = vpack.c.bf16 %v1052_v51, %v1052_v51  ;;  %v2732_v56 = vpop.f32.mrb[11].mxu1 }
 0x582   : > { %2736 = vmatmul.mubr.msk.bf16.vlgmr.msra.gmra.mrb[12].mxu0 %vm828_vm2, %v1053_v55 }
 0x583   : > { %2746 = vmatpush3.bf16.xpose.msra.mxu0 %v1160_v57  ;;  %2747 = vmatprep.mubr.msk.bf16.mxu0 %vm3316_vm0, %v3314_v3  ;;  %v3029_v57 = vld [vmem:[#allocation7 + $0x18] sm:$0xff]  }
 0x584   : > { %2757 = vmatprep.subr.bf16.mxu0 %v3314_v3 }
 0x58a   : > { %2748 = vmatmul.mubr.msk.bf16.vlgmr.msra.gmra.mrb[16].mxu0 %vm828_vm2, %v1153_v59 }
 0x58b   : > { %2759 = vmatprep.mubr.msk.bf16.mxu0 %vm3316_vm0, %v3314_v3  ;;  %2758 = vmatpush3.bf16.msra.mxu0 %v3028_v25 }
 0x58c   : > { %2769 = vmatprep.subr.bf16.mxu0 %v3314_v3 }
 0x61d   : > { %v1146_v60 = vpop.f32.mrb[12].mxu1 }
 0x61e   : > { %v2743_v61 = vpop.f32.mrb[13].mxu1 }
 0x61f   : > { %v1149_v63 = vpop.f32.mrb[14].mxu1 }
 0x620   : > { %v2744_v0 = vpop.f32.mrb[15].mxu1 }
 0x655   : > { %v1097_v2 = vpop.f32.mrb[12].mxu0 }
 0x656   : > { %v3725_v4 = vadd.f32 %v1146_v60, %v1097_v2  ;;  %v2737_v5 = vpop.f32.mrb[13].mxu0 }
 0x657   : > { %v1100_v6 = vpop.f32.mrb[14].mxu0 }
 0x658   : > { %v2738_v7 = vpop.f32.mrb[15].mxu0 }
 0x65d   : > { %v1196_v9 = vpop.f32.mrb[16].mxu0 }
 0x65e   : > { %v1202_v10 = vmul.f32 0.25, %v1196_v9  ;;  %v2749_v11 = vpop.f32.mrb[17].mxu0 }
 0x65f   : > { %v1199_v12 = vpop.f32.mrb[18].mxu0 }
 0x660   : > { %v2750_v13 = vpop.f32.mrb[19].mxu0  ;;  %v1203_v14 = vadd.f32 %v1202_v10, %v3686_v8 }
 0x662   : > { %v1204_v15 = vsel %vm877_vm4, %v1203_v14, -inf }
 0x663   : > { %1205 = vmax.xlane.f32.xlu1 %v1204_v15 }
 0x674   : > { %1377 = vrot.lane.b32.xlu1 %v3662_v58, %s3319_s19  ;;  %s3968_s19 = sld [smem:[#allocation18_spill]] }
 0x6f0   : > { %v1206_v16 = vpop.xlane.xlu1 %1205 }
 0x6f1   : > { %v1207_v17 = vsub.f32 %v1203_v14, %v1206_v16 }
 0x6f3   : > { %v1208_v18 = vmul.f32 1.442695, %v1207_v17 }
 0x6f4   : > { %v1378_v31 = vpop.permute.xlu1 %1377 }
 0x6f5   : > { %3060 = vpow2.f32 %v1208_v18  ;;  %v1383_v35 = vsel %vm891_vm1, %v1378_v31, 0 }
 0x6ff   : > { %v3061_v19 = vpop.eup %3060 }
 0x700   : > { %v1210_v21 = vsel %vm877_vm4, %v3061_v19, 0.0  ;;  %v1213_v22 = vpack.c.bf16 %v3061_v19, %v3061_v19 }
 0x701   : > { %1211 = vadd.xlane.f32.xlu0 %v1210_v21 }
 0x702   : > { %2754 = vmatmul.mubr.msk.bf16.vlgmr.msra.gmra.mrb[16].mxu1 %vm877_vm4, %v1213_v22 }
 0x703   : > { %2764 = vmatpush3.bf16.xpose.msra.mxu1 %v1323_v23  ;;  %2765 = vmatprep.mubr.msk.bf16.mxu1 %vm3316_vm0, %v3314_v3 }
 0x704   : > { %2775 = vmatprep.subr.bf16.mxu1 %v3314_v3 }
 0x70a   : > { %2766 = vmatmul.mubr.msk.bf16.vlgmr.msra.gmra.mrb[20].mxu1 %vm828_vm2, %v1316_v24 }
 0x70b   : > { %2777 = vmatprep.mubr.msk.bf16.mxu1 %vm3316_vm0, %v3314_v3  ;;  %2776 = vmatpush3.bf16.msra.mxu1 %v3029_v57 }
 0x70c   : > { %2787 = vmatprep.subr.bf16.mxu1 %v3314_v3 }
 0x78e   : > { %v1212_v26 = vpop.xlane.xlu0 %1211 }
 0x78f   : > { %3062 = vrcp.f32 %v1212_v26 }
 0x799   : > { %v3063_v27 = vpop.eup %3062 }
 0x7d5   : > { %v1256_v28 = vpop.f32.mrb[16].mxu1 }
 0x7d6   : > { %v1263_v29 = vmul.f32 %v3063_v27, %v1256_v28  ;;  %v2755_v30 = vpop.f32.mrb[17].mxu1 }
 0x7d7   : > { %v1259_v32 = vpop.f32.mrb[18].mxu1  ;;  %v3030_v30 = vld [vmem:[#allocation7 + $0x20] sm:$0xff]  }
 0x7d8   : > { %v1264_v33 = vpack.c.bf16 %v1263_v29, %v1263_v29  ;;  %v2756_v34 = vpop.f32.mrb[19].mxu1 }
 0x7da   : > { %2760 = vmatmul.mubr.msk.bf16.vlgmr.msra.gmra.mrb[20].mxu0 %vm828_vm2, %v1264_v33 }
 0x7db   : > { %2770 = vmatpush3.bf16.msra.mxu0 %v1383_v35  ;;  %2771 = vmatprep.mubr.msk.bf16.mxu0 %vm3316_vm0, %v3314_v3 }
 0x7dc   : > { %2781 = vmatprep.subr.bf16.mxu0 %v3314_v3 }
 0x7dd   : > { %v1359_v36 = vpop.f32.mrb[20].mxu1 }
 0x7de   : > { %v1365_v37 = vmul.f32 0.25, %v1359_v36  ;;  %v2767_v38 = vpop.f32.mrb[21].mxu1 }
 0x7df   : > { %v1362_v39 = vpop.f32.mrb[22].mxu1 }
 0x7e0   : > { %v2768_v40 = vpop.f32.mrb[23].mxu1  ;;  %v1366_v41 = vadd.f32 %v1365_v37, %v3686_v8 }
 0x7e2   : > { %v1367_v42 = vsel %vm877_vm4, %v1366_v41, -inf }
 0x7e3   : > { %1368 = vmax.xlane.f32.xlu1 %v1367_v42 }
 0x7f4   : > { %1480 = vrot.lane.b32.xlu1 %v3664_v62, %s3320_s21 }
 0x7f8   : > { %1478 = vrot.lane.b32.xlu1 %v3672_v1, %s3320_s21 }
 0x870   : > { %v1369_v43 = vpop.xlane.xlu1 %1368 }
 0x871   : > { %v1370_v44 = vsub.f32 %v1366_v41, %v1369_v43 }
 0x873   : > { %v1371_v45 = vmul.f32 1.442695, %v1370_v44 }
 0x874   : > { %v1481_v47 = vpop.permute.xlu1 %1480 }
 0x875   : > { %3064 = vpow2.f32 %v1371_v45  ;;  %v1486_v50 = vsel %vm828_vm2, %v1481_v47, 0 }
 0x878   : > { %v1479_v51 = vpop.permute.xlu1 %1478 }
 0x87f   : > { %v3065_v46 = vpop.eup %3064 }
 0x880   : > { %v1373_v48 = vsel %vm877_vm4, %v3065_v46, 0.0  ;;  %v1376_v49 = vpack.c.bf16 %v3065_v46, %v3065_v46 }
 0x881   : > { %1374 = vadd.xlane.f32.xlu0 %v1373_v48 }
 0x882   : > { %2772 = vmatmul.mubr.msk.bf16.vlgmr.msra.gmra.mrb[24].mxu0 %vm877_vm4, %v1376_v49 }
 0x883   : > { %2782 = vmatpush3.bf16.xpose.msra.mxu0 %v1486_v50  ;;  %2783 = vmatprep.mubr.msk.bf16.mxu0 %vm3316_vm0, %v3314_v3 }
 0x884   : > { %2793 = vmatprep.subr.bf16.mxu0 %v3314_v3 }
 0x88a   : > { %2784 = vmatmul.mubr.msk.bf16.vlgmr.msra.gmra.mrb[28].mxu0 %vm828_vm2, %v1479_v51 }
 0x88b   : > { %2795 = vmatprep.mubr.msk.bf16.mxu0 %vm3316_vm0, %v3314_v3  ;;  %2794 = vmatpush3.bf16.msra.mxu0 %v3030_v30 }
 0x88c   : > { %2805 = vmatprep.subr.bf16.mxu0 %v3314_v3 }
 0x897   : > { %1540 = vrot.lane.b32.xlu0 %v3662_v58, %s3320_s21 }
 0x89b   : > { %1643 = vrot.lane.b32.xlu0 %v3664_v62, %s3321_s29 }
 0x89f   : > { %1641 = vrot.lane.b32.xlu0 %v3672_v1, %s3321_s29 }
 0x8ad   : > { %v1308_v52 = vpop.f32.mrb[20].mxu0 }
 0x8ae   : > { %v1314_v53 = vadd.f32 %v1308_v52, %v3725_v4  ;;  %v2761_v54 = vpop.f32.mrb[21].mxu0 }
 0x8af   : > { %v1311_v55 = vpop.f32.mrb[22].mxu0 }
 0x8b0   : > { %v2762_v56 = vpop.f32.mrb[23].mxu0 }
 0x90e   : > { %v1375_v59 = vpop.xlane.xlu0 %1374 }
 0x90f   : > { %3066 = vrcp.f32 %v1375_v59 }
 0x912   : > { %v1541_v2 = vpop.permute.xlu0 %1540 }
 0x913   : > { %v1546_v9 = vsel %vm891_vm1, %v1541_v2, 0 }
 0x916   : > { %v1644_v20 = vpop.permute.xlu0 %1643 }
 0x917   : > { %v1649_v23 = vsel %vm828_vm2, %v1644_v20, 0 }
 0x919   : > { %v3067_v60 = vpop.eup %3066 }
 0x91a   : > { %v1642_v24 = vpop.permute.xlu0 %1641 }
 0x955   : > { %v1419_v61 = vpop.f32.mrb[24].mxu0 }
 0x956   : > { %v1426_v63 = vmul.f32 %v3067_v60, %v1419_v61  ;;  %v2773_v0 = vpop.f32.mrb[25].mxu0 }
 0x957   : > { %v1422_v5 = vpop.f32.mrb[26].mxu0  ;;  %v3031_v0 = vld [vmem:[#allocation7 + $0x28] sm:$0xff]  }
 0x958   : > { %v1427_v6 = vpack.c.bf16 %v1426_v63, %v1426_v63  ;;  %v2774_v7 = vpop.f32.mrb[27].mxu0 }
 0x95a   : > { %2778 = vmatmul.mubr.msk.bf16.vlgmr.msra.gmra.mrb[24].mxu1 %vm828_vm2, %v1427_v6 }
 0x95b   : > { %2788 = vmatpush3.bf16.msra.mxu1 %v1546_v9  ;;  %2789 = vmatprep.mubr.msk.bf16.mxu1 %vm3316_vm0, %v3314_v3 }
 0x95c   : > { %2799 = vmatprep.subr.bf16.mxu1 %v3314_v3 }
 0x95d   : > { %v1522_v4 = vpop.f32.mrb[28].mxu0 }
 0x95e   : > { %v1528_v10 = vmul.f32 0.25, %v1522_v4  ;;  %v2785_v11 = vpop.f32.mrb[29].mxu0 }
 0x95f   : > { %v1525_v12 = vpop.f32.mrb[30].mxu0 }
 0x960   : > { %v2786_v13 = vpop.f32.mrb[31].mxu0  ;;  %v1529_v14 = vadd.f32 %v1528_v10, %v3686_v8 }
 0x962   : > { %v1530_v15 = vsel %vm877_vm4, %v1529_v14, -inf }
 0x963   : > { %1531 = vmax.xlane.f32.xlu1 %v1530_v15 }
 0x974   : > { %1703 = vrot.lane.b32.xlu1 %v3662_v58, %s3321_s29  ;;  %s3324_s29 = smov [#allocation11]  }
 0x9f0   : > { %v1532_v16 = vpop.xlane.xlu1 %1531 }
 0x9f1   : > { %v1533_v17 = vsub.f32 %v1529_v14, %v1532_v16 }
 0x9f3   : > { %v1534_v18 = vmul.f32 1.442695, %v1533_v17 }
 0x9f4   : > { %v1704_v36 = vpop.permute.xlu1 %1703 }
 0x9f5   : > { %3068 = vpow2.f32 %v1534_v18  ;;  %v1709_v40 = vsel %vm891_vm1, %v1704_v36, 0 }
 0x9ff   : > { %v3069_v19 = vpop.eup %3068 }
 0xa00   : > { %v1536_v21 = vsel %vm877_vm4, %v3069_v19, 0.0  ;;  %v1539_v22 = vpack.c.bf16 %v3069_v19, %v3069_v19 }
 0xa01   : > { %1537 = vadd.xlane.f32.xlu0 %v1536_v21 }
 0xa02   : > { %2790 = vmatmul.mubr.msk.bf16.vlgmr.msra.gmra.mrb[28].mxu1 %vm877_vm4, %v1539_v22 }
 0xa03   : > { %2800 = vmatpush3.bf16.xpose.msra.mxu1 %v1649_v23  ;;  %2801 = vmatprep.mubr.msk.bf16.mxu1 %vm3316_vm0, %v3314_v3 }
 0xa04   : > { %2811 = vmatprep.subr.bf16.mxu1 %v3314_v3 }
 0xa0a   : > { %2802 = vmatmul.mubr.msk.bf16.vlgmr.msra.gmra.mrb[32].mxu1 %vm828_vm2, %v1642_v24 }
 0xa0b   : > { %2813 = vmatprep.mubr.msk.bf16.mxu1 %vm3316_vm0, %v3314_v3  ;;  %2812 = vmatpush3.bf16.msra.mxu1 %v3031_v0 }
 0xa0c   : > { %2823 = vmatprep.subr.bf16.mxu1 %v3314_v3 }
 0xa2d   : > { %v1471_v25 = vpop.f32.mrb[24].mxu1 }
 0xa2e   : > { %v1477_v26 = vadd.f32 %v1471_v25, %v1314_v53  ;;  %v2779_v27 = vpop.f32.mrb[25].mxu1 }
 0xa2f   : > { %v1474_v28 = vpop.f32.mrb[26].mxu1 }
 0xa30   : > { %v2780_v29 = vpop.f32.mrb[27].mxu1 }
 0xa8e   : > { %v1538_v31 = vpop.xlane.xlu0 %1537 }
 0xa8f   : > { %3070 = vrcp.f32 %v1538_v31 }
 0xa99   : > { %v3071_v32 = vpop.eup %3070 }
 0xad5   : > { %v1582_v33 = vpop.f32.mrb[28].mxu1 }
 0xad6   : > { %v1589_v34 = vmul.f32 %v3071_v32, %v1582_v33  ;;  %v2791_v35 = vpop.f32.mrb[29].mxu1  ;;  %v3032_v33 = vld [vmem:[#allocation7 + $0x30] sm:$0xff]  }
 0xad7   : > { %v1585_v37 = vpop.f32.mrb[30].mxu1 }
 0xad8   : > { %v1590_v38 = vpack.c.bf16 %v1589_v34, %v1589_v34  ;;  %v2792_v39 = vpop.f32.mrb[31].mxu1 }
 0xada   : > { %2796 = vmatmul.mubr.msk.bf16.vlgmr.msra.gmra.mrb[32].mxu0 %vm828_vm2, %v1590_v38 }
 0xadb   : > { %2806 = vmatpush3.bf16.msra.mxu0 %v1709_v40  ;;  %2807 = vmatprep.mubr.msk.bf16.mxu0 %vm3316_vm0, %v3314_v3 }
 0xadc   : > { %2817 = vmatprep.subr.bf16.mxu0 %v3314_v3 }
 0xadd   : > { %v1685_v41 = vpop.f32.mrb[32].mxu1 }
 0xade   : > { %v1691_v42 = vmul.f32 0.25, %v1685_v41  ;;  %v2803_v43 = vpop.f32.mrb[33].mxu1 }
 0xadf   : > { %v1688_v44 = vpop.f32.mrb[34].mxu1 }
 0xae0   : > { %v2804_v45 = vpop.f32.mrb[35].mxu1  ;;  %v1692_v46 = vadd.f32 %v1691_v42, %v3686_v8 }
 0xae2   : > { %v1693_v47 = vsel %vm877_vm4, %v1692_v46, -inf }
 0xae3   : > { %1694 = vmax.xlane.f32.xlu1 %v1693_v47 }
 0xaf4   : > { %1806 = vrot.lane.b32.xlu1 %v3664_v62, %s3322_s15 }
 0xaf8   : > { %1804 = vrot.lane.b32.xlu1 %v3672_v1, %s3322_s15 }
 0xb70   : > { %v1695_v48 = vpop.xlane.xlu1 %1694 }
 0xb71   : > { %v1696_v49 = vsub.f32 %v1692_v46, %v1695_v48 }
 0xb73   : > { %v1697_v50 = vmul.f32 1.442695, %v1696_v49 }
 0xb74   : > { %v1807_v52 = vpop.permute.xlu1 %1806 }
 0xb75   : > { %3072 = vpow2.f32 %v1697_v50  ;;  %v1812_v55 = vsel %vm828_vm2, %v1807_v52, 0 }
 0xb78   : > { %v1805_v56 = vpop.permute.xlu1 %1804 }
 0xb7f   : > { %v3073_v51 = vpop.eup %3072 }
 0xb80   : > { %v1699_v53 = vsel %vm877_vm4, %v3073_v51, 0.0  ;;  %v1702_v54 = vpack.c.bf16 %v3073_v51, %v3073_v51 }
 0xb81   : > { %1700 = vadd.xlane.f32.xlu0 %v1699_v53 }
 0xb82   : > { %2808 = vmatmul.mubr.msk.bf16.vlgmr.msra.gmra.mrb[36].mxu0 %vm877_vm4, %v1702_v54 }
 0xb83   : > { %2818 = vmatpush3.bf16.xpose.msra.mxu0 %v1812_v55  ;;  %2819 = vmatprep.mubr.msk.bf16.mxu0 %vm3316_vm0, %v3314_v3 }
 0xb84   : > { %2829 = vmatprep.subr.bf16.mxu0 %v3314_v3 }
 0xb8a   : > { %2820 = vmatmul.mubr.msk.bf16.vlgmr.msra.gmra.mrb[40].mxu0 %vm828_vm2, %v1805_v56 }
 0xb8b   : > { %2831 = vmatprep.mubr.msk.bf16.mxu0 %vm3316_vm0, %v3314_v3  ;;  %2830 = vmatpush3.bf16.msra.mxu0 %v3032_v33  ;;  %v3046_v33 = vld [vmem:[#allocation10 + $0x20] sm:$0xff]  }
 0xb8c   : > { %2841 = vmatprep.subr.bf16.mxu0 %v3314_v3 }
 0xb97   : > { %1866 = vrot.lane.b32.xlu0 %v3662_v58, %s3322_s15  ;;  %s3969_s15 = sld [smem:[#allocation19_spill]] }
 0xb9b   : > { %1969 = vrot.lane.b32.xlu0 %v3664_v62, %s3323_s8 }
 0xb9f   : > { %1967 = vrot.lane.b32.xlu0 %v3672_v1, %s3323_s8 }
 0xbad   : > { %v1634_v57 = vpop.f32.mrb[32].mxu0 }
 0xbae   : > { %v1640_v59 = vadd.f32 %v1634_v57, %v1477_v26  ;;  %v2797_v60 = vpop.f32.mrb[33].mxu0 }
 0xbaf   : > { %v1637_v61 = vpop.f32.mrb[34].mxu0 }
 0xbb0   : > { %v2798_v63 = vpop.f32.mrb[35].mxu0 }
 0xc0e   : > { %v1701_v2 = vpop.xlane.xlu0 %1700 }
 0xc0f   : > { %3074 = vrcp.f32 %v1701_v2 }
 0xc12   : > { %v1867_v4 = vpop.permute.xlu0 %1866 }
 0xc13   : > { %v1872_v1 = vsel %vm891_vm1, %v1867_v4, 0 }
 0xc16   : > { %v1970_v23 = vpop.permute.xlu0 %1969 }
 0xc17   : > { %v1975_v26 = vsel %vm828_vm2, %v1970_v23, 0  ;;  %v3036_v23 = vld [vmem:[#allocation8 + $0x10] sm:$0xff]  }
 0xc19   : > { %v3075_v5 = vpop.eup %3074 }
 0xc1a   : > { %v1968_v27 = vpop.permute.xlu0 %1967 }
 0xc55   : > { %v1745_v6 = vpop.f32.mrb[36].mxu0 }
 0xc56   : > { %v1752_v7 = vmul.f32 %v3075_v5, %v1745_v6  ;;  %v2809_v9 = vpop.f32.mrb[37].mxu0 }
 0xc57   : > { %v1748_v62 = vpop.f32.mrb[38].mxu0 }
 0xc58   : > { %v1753_v10 = vpack.c.bf16 %v1752_v7, %v1752_v7  ;;  %v2810_v11 = vpop.f32.mrb[39].mxu0 }
 0xc5a   : > { %2814 = vmatmul.mubr.msk.bf16.vlgmr.msra.gmra.mrb[36].mxu1 %vm828_vm2, %v1753_v10 }
 0xc5b   : > { %2824 = vmatpush3.bf16.msra.mxu1 %v1872_v1  ;;  %2825 = vmatprep.mubr.msk.bf16.mxu1 %vm3316_vm0, %v3314_v3 }
 0xc5c   : > { %2835 = vmatprep.subr.bf16.mxu1 %v3314_v3 }
 0xc5d   : > { %v1848_v12 = vpop.f32.mrb[40].mxu0 }
 0xc5e   : > { %v1854_v13 = vmul.f32 0.25, %v1848_v12  ;;  %v2821_v14 = vpop.f32.mrb[41].mxu0  ;;  %v2589_v12 = vld [vmem:[%s3934_s6] ss:$0 sm:$0xff] }
 0xc5f   : > { %v1851_v15 = vpop.f32.mrb[42].mxu0 }
 0xc60   : > { %v2822_v16 = vpop.f32.mrb[43].mxu0  ;;  %v1855_v17 = vadd.f32 %v1854_v13, %v3686_v8  ;;  %v3086_v13 = vld [vmem:[%s3622_s20] sm:$0xff]  ;;  %s2611_s20 = sshll.u32 %s3416_s14, 7  ;;  %s2394_s14 = scalar_lea.sflag [#allocation4], %s3616_s3 }
 0xc62   : > { %v1856_v18 = vsel %vm877_vm4, %v1855_v17, -inf }
 0xc63   : > { %1857 = vmax.xlane.f32.xlu1 %v1856_v18  ;;  %v3035_v18 = vld [vmem:[#allocation8 + $0x8] sm:$0xff]  }
 0xcf0   : > { %v1858_v19 = vpop.xlane.xlu1 %1857 }
 0xcf1   : > { %v1859_v20 = vsub.f32 %v1855_v17, %v1858_v19  ;;  %v3034_v17 = vld [vmem:[#allocation8] sm:$0xff]  }
 0xcf3   : > { %v1860_v21 = vmul.f32 1.442695, %v1859_v20 }
 0xcf5   : > { %3076 = vpow2.f32 %v1860_v21 }
 0xcff   : > { %v3077_v22 = vpop.eup %3076 }
 0xd00   : > { %v1862_v24 = vsel %vm877_vm4, %v3077_v22, 0.0  ;;  %v1865_v25 = vpack.c.bf16 %v3077_v22, %v3077_v22 }
 0xd01   : > { %1863 = vadd.xlane.f32.xlu0 %v1862_v24  ;;  %v3037_v24 = vld [vmem:[#allocation8 + $0x18] sm:$0xff]  }
 0xd02   : > { %2826 = vmatmul.mubr.msk.bf16.vlgmr.msra.gmra.mrb[40].mxu1 %vm877_vm4, %v1865_v25  ;;  %v3038_v25 = vld [vmem:[#allocation8 + $0x20] sm:$0xff]  }
 0xd03   : > { %2836 = vmatpush3.bf16.xpose.msra.mxu1 %v1975_v26  ;;  %2837 = vmatprep.mubr.msk.bf16.mxu1 %vm3316_vm0, %v3314_v3  ;;  %v3039_v26 = vld [vmem:[#allocation8 + $0x28] sm:$0xff]  }
 0xd04   : > { %2847 = vmatprep.subr.bf16.mxu1 %v3314_v3 }
 0xd0a   : > { %2838 = vmatmul.mubr.msk.bf16.vlgmr.msra.gmra.mrb[44].mxu1 %vm828_vm2, %v1968_v27  ;;  %v3040_v27 = vld [vmem:[#allocation8 + $0x30] sm:$0xff]  }
 0xd0b   : > { %2849 = vmatprep.mubr.msk.bf16.mxu1 %vm3316_vm0, %v3314_v3 }
 0xd2d   : > { %v1797_v28 = vpop.f32.mrb[36].mxu1 }
 0xd2e   : > { %v1803_v29 = vadd.f32 %v1797_v28, %v1640_v59  ;;  %v2815_v30 = vpop.f32.mrb[37].mxu1  ;;  %v3041_v28 = vld [vmem:[#allocation8 + $0x38] sm:$0xff]  }
 0xd2f   : > { %v1800_v31 = vpop.f32.mrb[38].mxu1  ;;  %v3043_v30 = vld [vmem:[#allocation10 + $0x8] sm:$0xff]  }
 0xd30   : > { %v2816_v32 = vpop.f32.mrb[39].mxu1  ;;  %v3044_v31 = vld [vmem:[#allocation10 + $0x10] sm:$0xff]  }
 0xd31   : > { %v3045_v32 = vld [vmem:[#allocation10 + $0x18] sm:$0xff]  }
 0xd8e   : > { %v1864_v34 = vpop.xlane.xlu0 %1863 }
 0xd8f   : > { %3078 = vrcp.f32 %v1864_v34  ;;  %v3047_v34 = vld [vmem:[#allocation10 + $0x28] sm:$0xff]  }
 0xd99   : > { %v3079_v35 = vpop.eup %3078 }
 0xdd5   : > { %v1908_v36 = vpop.f32.mrb[40].mxu1 }
 0xdd6   : > { %v1915_v37 = vmul.f32 %v3079_v35, %v1908_v36  ;;  %v2827_v38 = vpop.f32.mrb[41].mxu1 }
 0xdd7   : > { %v1911_v39 = vpop.f32.mrb[42].mxu1 }
 0xdd8   : > { %v1916_v40 = vpack.c.bf16 %v1915_v37, %v1915_v37  ;;  %v2828_v41 = vpop.f32.mrb[43].mxu1  ;;  %v2590_v39 = vld [vmem:[%s3967_s23] ss:$0 sm:$0xff]  ;;  %s2407_s23 = sshll.u32 %s513_s12, 4  ;;  %s3886_s23 = int_to_ptr.vmem [resolvable:$true] %s2407_s23 }
 0xdd9   : > { %v2591_v41 = vld [vmem:[%s3968_s19] ss:$0 sm:$0xff]  ;;  %s3971_s19 = sld [smem:[#allocation21_spill]]  ;;  %s3229_s30 = scalar_lea.vmem %s3886_s23, 128 }
 0xdda   : > { %2832 = vmatmul.mubr.msk.bf16.vlgmr.msra.gmra.mrb[44].mxu0 %vm828_vm2, %v1916_v40  ;;  %p3230_p6 = scmp.ne.s32.totalorder %s3886_s23, %s3229_s30 }
 0xddb   : > { %2843 = vmatprep.mubr.msk.bf16.mxu0 %vm3316_vm0, %v3314_v3 }
 0xddc   : > { %p3231_p2 = pnand %p3230_p6, %p3972_p0 }
 0xddd   : > { %v2011_v42 = vpop.f32.mrb[44].mxu1 }
 0xdde   : > { %v2017_v43 = vmul.f32 0.25, %v2011_v42  ;;  %v2839_v44 = vpop.f32.mrb[45].mxu1  ;;  %p3232_p5 = pneg %p3231_p2 }
 0xddf   : > { %v2014_v45 = vpop.f32.mrb[46].mxu1  ;;  %s3884_s21 = scalar_lea.hbm %s3971_s19, %s2611_s20 }
 0xde0   : > { %v2840_v46 = vpop.f32.mrb[47].mxu1  ;;  %v2018_v47 = vadd.f32 %v2017_v43, %v3686_v8  ;;  %v3048_v45 = vld [vmem:[#allocation10 + $0x30] sm:$0xff]  }
 0xde1   : > { %v3049_v46 = vld [vmem:[#allocation10 + $0x38] sm:$0xff]  }
 0xde2   : > { %v2019_v48 = vsel %vm877_vm4, %v2018_v47, -inf }
 0xde3   : > { %2020 = vmax.xlane.f32.xlu1 %v2019_v48 }
 0xdf4   : > { %2029 = vrot.lane.b32.xlu1 %v3662_v58, %s3323_s8  ;;  %v3033_v58 = vld [vmem:[#allocation7 + $0x38] sm:$0xff]  }
 0xdf5   : > { %2848 = vmatpush3.bf16.msra.mxu1 %v3033_v58 }
 0xdf6   : > { %2873 = vmatprep.subr.bf16.mxu1 %v3314_v3 }
 0xe70   : > { %v2021_v49 = vpop.xlane.xlu1 %2020 }
 0xe71   : > { %v2022_v50 = vsub.f32 %v2018_v47, %v2021_v49  ;;  %v2592_v47 = vld [vmem:[%s3969_s15] ss:$0 sm:$0xff]  ;;  %s3233_s15 = sshll.u32 %s3324_s29, 4  ;;  %s3234_s15 = int_to_ptr.vmem [resolvable:$false] %s3233_s15 }
 0xe72   : > { %s3235_s8 = scalar_lea.vmem %s3234_s15, 256  ;;  %p3236_p10 = scmp.lt.s32.totalorder %s3886_s23, %s3234_s15 }
 0xe73   : > { %v2023_v51 = vmul.f32 1.442695, %v2022_v50  ;;  %p3237_p1 = scmp.lt.s32.totalorder %s3235_s8, %s3229_s30 }
 0xe74   : > { %v2030_v52 = vpop.permute.xlu1 %2029 }
 0xe75   : > { %3080 = vpow2.f32 %v2023_v51  ;;  %v2035_v53 = vsel %vm891_vm1, %v2030_v52, 0  ;;  %p3238_p11 = por %p3237_p1, %p3236_p10 }
 0xe76   : > { %2842 = vmatpush3.bf16.msra.mxu0 %v2035_v53 }
 0xe77   : > { %2853 = vmatprep.subr.bf16.mxu0 %v3314_v3  ;;  %p3239_p12 = pnand %p3238_p11, %p3232_p5 }
 0xe7f   : > { %v3081_v54 = vpop.eup %3080 }
 0xe80   : > { %v2025_v55 = vsel %vm877_vm4, %v3081_v54, 0.0  ;;  %v2028_v8 = vpack.c.bf16 %v3081_v54, %v3081_v54 }
 0xe81   : > { %2026 = vadd.xlane.f32.xlu1 %v2025_v55  ;;  %v2601_v55 = vld [vmem:[%s3970_s13] ss:$0 sm:$0xff] }
 0xe82   : > { %2844 = vmatmul.mubr.msk.bf16.vlgmr.msra.gmra.mrb[48].mxu0 %vm877_vm4, %v2028_v8 }
 0xe83   : > { %2869 = vmatprep.mubr.msk.bf16.mxu0 %vm3316_vm0, %v3314_v3  ;;  %2854 = vmatpush3.bf16.msra.mxu0 %v3034_v17 }
 0xe84   : > { %2855 = vmatprep.subr.bf16.mxu0 %v3314_v3 }
 0xe87   : > { %2856 = vmatpush3.bf16.msra.mxu0 %v3035_v18 }
 0xe88   : > { %2857 = vmatprep.subr.bf16.mxu0 %v3314_v3 }
 0xe8b   : > { %2858 = vmatpush3.bf16.msra.mxu0 %v3036_v23 }
 0xe8c   : > { %2859 = vmatprep.subr.bf16.mxu0 %v3314_v3 }
 0xe8f   : > { %2860 = vmatpush3.bf16.msra.mxu0 %v3037_v24 }
 0xe90   : > { %2861 = vmatprep.subr.bf16.mxu0 %v3314_v3 }
 0xe93   : > { %2862 = vmatpush3.bf16.msra.mxu0 %v3038_v25 }
 0xe94   : > { %2863 = vmatprep.subr.bf16.mxu0 %v3314_v3 }
 0xe97   : > { %2864 = vmatpush3.bf16.msra.mxu0 %v3039_v26 }
 0xe98   : > { %2865 = vmatprep.subr.bf16.mxu0 %v3314_v3 }
 0xe9b   : > { %2866 = vmatpush3.bf16.msra.mxu0 %v3040_v27 }
 0xe9c   : > { %2867 = vmatprep.subr.bf16.mxu0 %v3314_v3 }
 0xe9f   : > { %2868 = vmatpush3.bf16.msra.mxu0 %v3041_v28 }
 0xead   : > { %v1960_v56 = vpop.f32.mrb[44].mxu0 }
 0xeae   : > { %v1966_v57 = vadd.f32 %v1960_v56, %v1803_v29  ;;  %v2833_v59 = vpop.f32.mrb[45].mxu0  ;;  %v3042_v29 = vld [vmem:[#allocation10] sm:$0xff]  }
 0xeaf   : > { %v1963_v60 = vpop.f32.mrb[46].mxu0 }
 0xeb0   : > { %v2834_v61 = vpop.f32.mrb[47].mxu0 }
 0xf0e   : > { %v2027_v63 = vpop.xlane.xlu1 %2026 }
 0xf0f   : > { %3082 = vrcp.f32 %v2027_v63 }
 0xf19   : > { %v3083_v0 = vpop.eup %3082 }
 0xf55   : > { %v2071_v2 = vpop.f32.mrb[48].mxu0 }
 0xf56   : > { %v2078_v5 = vmul.f32 %v3083_v0, %v2071_v2  ;;  %v2845_v6 = vpop.f32.mrb[49].mxu0 }
 0xf57   : > { %v2074_v7 = vpop.f32.mrb[50].mxu0 }
 0xf58   : > { %v2079_v9 = vpack.c.bf16 %v2078_v5, %v2078_v5  ;;  %v2846_v4 = vpop.f32.mrb[51].mxu0 }
 0xf5a   : > { %2850 = vmatmul.mubr.msk.bf16.vlgmr.msra.gmra.mrb[48].mxu1 %vm828_vm2, %v2079_v9 }
 0xf5b   : > { %2889 = vmatprep.mubr.msk.bf16.mxu1 %vm3316_vm0, %v3314_v3  ;;  %2874 = vmatpush3.bf16.msra.mxu1 %v3042_v29 }
 0xf5c   : > { %2875 = vmatprep.subr.bf16.mxu1 %v3314_v3 }
 0xf5f   : > { %2876 = vmatpush3.bf16.msra.mxu1 %v3043_v30 }
 0xf60   : > { %2877 = vmatprep.subr.bf16.mxu1 %v3314_v3 }
 0xf63   : > { %2878 = vmatpush3.bf16.msra.mxu1 %v3044_v31 }
 0xf64   : > { %2879 = vmatprep.subr.bf16.mxu1 %v3314_v3 }
 0xf67   : > { %2880 = vmatpush3.bf16.msra.mxu1 %v3045_v32 }
 0xf68   : > { %2881 = vmatprep.subr.bf16.mxu1 %v3314_v3 }
 0xf6b   : > { %2882 = vmatpush3.bf16.msra.mxu1 %v3046_v33 }
 0xf6c   : > { %2883 = vmatprep.subr.bf16.mxu1 %v3314_v3 }
 0xf6f   : > { %2884 = vmatpush3.bf16.msra.mxu1 %v3047_v34 }
 0xf70   : > { %2885 = vmatprep.subr.bf16.mxu1 %v3314_v3 }
 0xf73   : > { %2886 = vmatpush3.bf16.msra.mxu1 %v3048_v45 }
 0xf74   : > { %2887 = vmatprep.subr.bf16.mxu1 %v3314_v3 }
 0xf77   : > { %2888 = vmatpush3.bf16.msra.mxu1 %v3049_v46 }
0x102d   : > { %v2123_v62 = vpop.f32.mrb[48].mxu1 }
0x102e   : > { %v2129_v10 = vadd.f32 %v2123_v62, %v1966_v57  ;;  %v2851_v11 = vpop.f32.mrb[49].mxu1 }
0x102f   : > { %v2126_v1 = vpop.f32.mrb[50].mxu1 }
0x1030   : > { %v2130_v14 = vadd.f32 %v3086_v13, %v2129_v10  ;;  %v2852_v15 = vpop.f32.mrb[51].mxu1 }
0x1032   : > { %v3847_v16 = vadd.f32 %v2589_v12, %v2130_v14 }
0x1034   : > { %2141 = vadd.xlane.f32.xlu0 %v3847_v16 }
0x10c1   : > { %v2142_v19 = vpop.xlane.xlu0 %2141 }
0x10c2   : > { %v2143_v20 = vmul.f32 0.0078125, %v2142_v19 }
0x10c4   : > { %v2144_v21 = vsub.f32 %v3847_v16, %v2143_v20 }
0x10c6   : > { %v2145_v22 = vmul.f32 %v2144_v21, %v2144_v21 }
0x10c8   : > { %2146 = vadd.xlane.f32.xlu0 %v2145_v22 }
0x1155   : > { %v2147_v35 = vpop.xlane.xlu0 %2146 }
0x1156   : > { %v2148_v36 = vmul.f32 0.0078125, %v2147_v35 }
0x1158   : > { %v2149_v37 = vadd.f32 1e-05, %v2148_v36 }
0x115a   : > { %3084 = vrsqrt.f32 %v2149_v37 }
0x1164   : > { %v3085_v38 = vpop.eup %3084 }
0x1165   : > { %v2151_v40 = vmul.f32 %v3085_v38, %v2144_v21 }
0x1167   : > { %v2158_v42 = vmul.f32 %v2590_v39, %v2151_v40 }
0x1169   : > { %v2165_v43 = vadd.f32 %v2591_v41, %v2158_v42 }
0x116b   : > { %v2182_v44 = vpack.c.bf16 %v2165_v43, %v2165_v43 }
0x116d   : > { %2870 = vmatmul.mubr.bf16.vlgmr.msra.gmra.mrb[52].mxu0 %v2182_v44 }
0x1240   : > { %v2272_v48 = vpop.f32.mrb[52].mxu0 }
0x1241   : > { %v2273_v49 = vadd.f32 %v2592_v47, %v2272_v48  ;;  %v2871_v50 = vpop.f32.mrb[53].mxu0 }
0x1242   : > { %v2275_v51 = vpop.f32.mrb[54].mxu0 }
0x1243   : > { %v2278_v52 = vmax.f32 %v2273_v49, 0.0  ;;  %v2872_v53 = vpop.f32.mrb[55].mxu0 }
0x1245   : > { %v2295_v54 = vpack.c.bf16 %v2278_v52, %v2278_v52 }
0x1247   : > { %2890 = vmatmul.mubr.bf16.vlgmr.msra.gmra.mrb[52].mxu1 %v2295_v54 }
0x131a   : > { %v2385_v3 = vpop.f32.mrb[52].mxu1 }
0x131b   : > { %v2386_v8 = vadd.f32 %v2601_v55, %v2385_v3  ;;  %v2891_v58 = vpop.f32.mrb[53].mxu1 }
0x131c   : > { %v2388_v56 = vpop.f32.mrb[54].mxu1 }
0x131d   : > { %v2391_v57 = vadd.f32 %v2386_v8, %v3847_v16  ;;  %v2892_v59 = vpop.f32.mrb[55].mxu1 }
0x131f   : > { %2392 = vst [vmem:[%s513_s12] sm:$0xff] %v2391_v57 }
0x1320   : > { %3242 = shalt.err (!%p3239_p12)
}
0x1321   : > { %s3243_s3 = scalar_lea.hbm %s3884_s21, 128  ;;  %s3247_s20 = scalar_lea.hbm %s3971_s19, 256 }
0x1322   : > { %p3244_p13 = scmp.ne.s32.totalorder %s3884_s21, %s3243_s3  ;;  %p3248_p9 = scmp.lt.u32.totalorder %s3884_s21, %s3971_s19 }
0x1323   : > { %p3249_p4 = scmp.lt.u32.totalorder %s3247_s20, %s3243_s3  ;;  %p3251_p6 = scmp.lt.u32.totalorder %s3243_s3, %s3884_s21 }
0x1324   : > { %p3245_p3 = pnand %p3244_p13, %p3972_p0 }
0x1325   : > { %p3250_p8 = por %p3249_p4, %p3248_p9 }
0x1326   : > { %p3246_p7 = pneg %p3245_p3 }
0x1327   : > { %p3252_p2 = por %p3251_p6, %p3250_p8 }
0x1329   : > { %p3253_p5 = pnand %p3252_p2, %p3246_p7 }
0x132b   : > { %3256 = shalt.err (!%p3253_p5)
}
0x132c   : > { %2911 = dma.vmem_to_hbm [thread:$0]  (%p3972_p0), %s3886_s23, 128, %s3884_s21, %s2394_s14  }
0x132d PF: > { %s2419_s10 = sand.u32 1, %s3291_s25   ;;  %p3973_p10 = scmp.ne.s32.totalorder %s3960_s17, 0 }
0x132e   : > { %p3974_p1 = scmp.ge.s32.totalorder %s3303_s28, 2  ;;  %s2420_s30 = scalar_lea.sflag [#allocation4], %s2419_s10 }
0x1330   : > { %p2931_p11 = pnand %p3974_p1, %p3973_p10 }
0x1332   : > { %3286 = dma.done.wait (!%p2931_p11), %s2420_s30, 128  }
0x1333   : > { %3288 = vsyncadd (!%p2931_p11), %s2420_s30, 4294967168  ;;  %p28_p12 = scmp.ge.s32.totalorder %s3540_s16, 4   ;;  %s3975_s25 = smov %s3295_s26 }
0x1334   : > { %s3976_s26 = smov %s3299_s27  ;;  %s3977_s27 = smov %s3551_s24 }
0x1335   : > { %s3978_s28 = smov %s3540_s16  ;;  %30 = sbr.rel (!%p28_p12) target bundleno = 14 (0xe), region = 133 }
0x133c   :  { %2425 = vsyncpa [#allocation3], 1 }
0x133d   :  { %2427 = vsyncpa [#allocation3 + $0x1], 1 }
0x133e   :  { %2428 = vsyncpa [#allocation6], 1 }
0x133f   :  { %2429 = vsyncpa [#allocation9], 1 }
0x1340   :  { %2430 = vsyncpa [#allocation4], 1 }
0x1341   :  { %2432 = vsyncpa [#allocation4 + $0x1], 1 }

</bundles_post_ra>
